<compile_context>
chip_gen: v7x
topology: tpu7x:2x2x1
jax: 0.10.0
libtpu: 0.0.40
codegen_flags: <defaults>
</compile_context>

<pallas_src>
import jax
import jax.numpy as jnp
from jax.experimental import pallas as pl
from jax.experimental.pallas import tpu as pltpu


def _cdiv(a, b):
    return -(-a // b)


def _round_up(a, m):
    return _cdiv(a, m) * m


def mlp_d_kernel(x_ref, w1_ref, b1_ref, w2_ref, b2_ref,
                 w3_ref, b3_ref, w4_ref, b4_ref, out_ref):
    """One (TB, d_in) batch tile: 3x (Linear+ReLU) + final ndf->1 reduction."""
    # x streams from HBM as f32; cast to bf16 in-register for the MXU.
    x = x_ref[...].astype(jnp.bfloat16)                       # (TB, d_in)

    # Layer 1: bf16 MXU matmul, f32 accumulation; bias + ReLU on f32 (VPU).
    h = jnp.dot(x, w1_ref[...], preferred_element_type=jnp.float32)
    h = jnp.maximum(h + b1_ref[...], 0.0)

    # Layer 2
    h = jnp.dot(h.astype(jnp.bfloat16), w2_ref[...],
                preferred_element_type=jnp.float32)
    h = jnp.maximum(h + b2_ref[...], 0.0)

    # Layer 3
    h = jnp.dot(h.astype(jnp.bfloat16), w3_ref[...],
                preferred_element_type=jnp.float32)
    h = jnp.maximum(h + b3_ref[...], 0.0)

    # Layer 4 (ndf -> 1, no sigmoid): VPU multiply + lane reduction; scalar
    # bias read from SMEM.
    # TODO(synk): optional add_sigmoid=True variant (jax.nn.sigmoid here).
    y = jnp.sum(h * w4_ref[...], axis=-1, keepdims=True) + b4_ref[0, 0]  # (TB,1)

    # Pack lane-dense: 128 consecutive batch results per output row, so the
    # HBM writeback is TB*4 bytes (unmasked vst) instead of a 128x broadcast.
    out_ref[...] = y.reshape(out_ref.shape).astype(out_ref.dtype)


def _choose_tiling(B, d_in, ndf):
    """Pick (TB, padded_B).  TB is a multiple of 128 (packed output rows of
    128 results) and sized so the kernel VMEM footprint stays ~<=12 MiB
    (safe on v5e 16 MiB scoped default; v6e 32 MiB; v7x 32 MiB scoped /
    64 MiB physical)."""
    TB_MAX = 1024                      # amortizes ~0.35us per-grid-step overhead
    VMEM_BUDGET = 12 * 1024 * 1024

    # Fixed VMEM-resident bytes: bf16 weights, f32 biases (x2 for buffering).
    fixed = 2 * (d_in * ndf * 2 + 2 * ndf * ndf * 2 + 3 * ndf * 4 + ndf * 4 + 4)

    def vmem_bytes(tb):
        x_db = 2 * tb * d_in * 4                       # f32 x tile, double-buffered
        out_db = 2 * tb * 4                            # packed f32 output tile
        interm = tb * d_in * 2 + 3 * tb * ndf * 4      # bf16 x copy + f32 activations
        return fixed + x_db + out_db + interm

    tb_cap = TB_MAX
    while tb_cap > 128 and vmem_bytes(tb_cap) > VMEM_BUDGET:
        tb_cap //= 2
    # TODO(synk): for very large d_in the resident weights themselves could
    # exceed the budget; that would need K-tiling of layer 1 (not done here).

    n_steps = _cdiv(B, tb_cap)
    if n_steps == 1 and B > 128:
        n_steps = 2                    # >=2 grid steps so v7x megacore uses both TCs
    TB = min(tb_cap, _round_up(_cdiv(B, n_steps), 128))
    return TB, n_steps * TB


def mlp_d_forward(x_nchw, params):
    """x_nchw: (B, nc, H, W) float32.  Returns (B, 1) float32."""
    B = x_nchw.shape[0]
    d_in = x_nchw.shape[1] * x_nchw.shape[2] * x_nchw.shape[3]

    (w1, b1, w2, b2, w3, b3, w4, b4) = params
    ndf = w1.shape[1]

    TB, padded_B = _choose_tiling(B, d_in, ndf)
    n_steps = padded_B // TB

    # Flatten (matches torch input.view).  No cast, no pad: the kernel casts
    # f32->bf16 in-register and any ragged tail rows are discarded below.
    xf = x_nchw.reshape(B, d_in)

    # bf16 weights for the MXU dots; f32 biases; layer-4 row + scalar bias.
    w1b = w1.astype(jnp.bfloat16)
    w2b = w2.astype(jnp.bfloat16)
    w3b = w3.astype(jnp.bfloat16)
    w4row = w4.T.astype(jnp.float32)          # (1, ndf)
    b4s = b4.astype(jnp.float32)              # (1, 1) -> SMEM scalar

    const = lambda i: (0, 0)                  # weights stay resident in VMEM

    out = pl.pallas_call(
        mlp_d_kernel,
        out_shape=jax.ShapeDtypeStruct((padded_B // 128, 128), jnp.float32),
        grid_spec=pltpu.PrefetchScalarGridSpec(
            num_scalar_prefetch=0,
            grid=(n_steps,),
            in_specs=[
                pl.BlockSpec((TB, d_in), lambda i: (i, 0)),        # x tile (f32)
                pl.BlockSpec((d_in, ndf), const),                  # w1
                pl.BlockSpec((1, ndf), const),                     # b1
                pl.BlockSpec((ndf, ndf), const),                   # w2
                pl.BlockSpec((1, ndf), const),                     # b2
                pl.BlockSpec((ndf, ndf), const),                   # w3
                pl.BlockSpec((1, ndf), const),                     # b3
                pl.BlockSpec((1, ndf), const),                     # w4 row
                pl.BlockSpec(memory_space=pltpu.MemorySpace.SMEM), # b4 scalar
            ],
            out_specs=pl.BlockSpec((TB // 128, 128), lambda i: (i, 0)),
        ),
        compiler_params=pltpu.CompilerParams(
            dimension_semantics=("parallel",)),
    )(xf, w1b, b1, w2b, b2, w3b, b3, w4row, b4s)

    # Unpack: row r, lane l of `out` holds batch element r*128 + l.
    return out.reshape(padded_B, 1)[:B]


def init_params(key, d_in, ndf):
    """Mimics torch.nn.Linear default init (uniform +-1/sqrt(fan_in)).

    Weights are stored as (in_features, out_features), f32 master copies."""
    ks = jax.random.split(key, 8)

    def linear(kw, kb, fan_in, fan_out):
        bound = 1.0 / jnp.sqrt(fan_in)
        w = jax.random.uniform(kw, (fan_in, fan_out), jnp.float32, -bound, bound)
        b = jax.random.uniform(kb, (1, fan_out), jnp.float32, -bound, bound)
        return w, b

    w1, b1 = linear(ks[0], ks[1], d_in, ndf)
    w2, b2 = linear(ks[2], ks[3], ndf, ndf)
    w3, b3 = linear(ks[4], ks[5], ndf, ndf)
    w4, b4 = linear(ks[6], ks[7], ndf, 1)
    return (w1, b1, w2, b2, w3, b3, w4, b4)


if __name__ == "__main__":
    # MLP_D(isize=16, nz=8, nc=4, ndf=32, ngpu=1, add_sigmoid=False)
    isize, nc, ndf, batch = 16, 4, 32, 2
    d_in = nc * isize * isize

    key = jax.random.PRNGKey(0)
    k_x, k_p = jax.random.split(key)
    x = jax.random.normal(k_x, (batch, nc, isize, isize), jnp.float32)
    params = init_params(k_p, d_in, ndf)

    y = mlp_d_forward(x, params)
    jax.block_until_ready(y)

    # Pure-JAX reference of the same math (bf16-rounded operands, f32 accum).
    (w1, b1, w2, b2, w3, b3, w4, b4) = params
    bf = lambda a: a.astype(jnp.bfloat16).astype(jnp.float32)
    xf = x.reshape(batch, d_in)
    h = jnp.maximum(bf(xf) @ bf(w1) + b1, 0.0)
    h = jnp.maximum(bf(h) @ bf(w2) + b2, 0.0)
    h = jnp.maximum(bf(h) @ bf(w3) + b3, 0.0)
    y_ref = jnp.sum(h * w4.T, axis=-1, keepdims=True) + b4

    assert y.shape == (batch, 1)
    assert jnp.allclose(y, y_ref, atol=1e-2, rtol=1e-2)

    print("KERNEL_OK")
</pallas_src>

<mosaic_0001>
module attributes {stable_mosaic.version = 11 : i64} {
  func.func @mlp_d_kernel(%arg0: i32, %arg1: memref<128x1024xf32, #tpu.memory_space<vmem>>, %arg2: memref<1024x32xbf16, #tpu.memory_space<vmem>>, %arg3: memref<1x32xf32, #tpu.memory_space<vmem>>, %arg4: memref<32x32xbf16, #tpu.memory_space<vmem>>, %arg5: memref<1x32xf32, #tpu.memory_space<vmem>>, %arg6: memref<32x32xbf16, #tpu.memory_space<vmem>>, %arg7: memref<1x32xf32, #tpu.memory_space<vmem>>, %arg8: memref<1x32xf32, #tpu.memory_space<vmem>>, %arg9: memref<1x1xf32, #tpu.memory_space<smem>>, %arg10: memref<1x128xf32, #tpu.memory_space<vmem>>) attributes {dimension_semantics = [#tpu.dimension_semantics<parallel>], iteration_bounds = array<i64: 1>, scalar_prefetch = 0 : i64, scratch_operands = 0 : i64, tpu.core_type = #tpu.core_type<tc>, window_params = [{transform_indices = @transform_0, window_bounds = array<i64: 128, 1024>}, {pipeline_mode = #tpu.pipeline_mode<synchronous>, transform_indices = @transform_1, window_bounds = array<i64: 1024, 32>}, {pipeline_mode = #tpu.pipeline_mode<synchronous>, transform_indices = @transform_2, window_bounds = array<i64: 1, 32>}, {pipeline_mode = #tpu.pipeline_mode<synchronous>, transform_indices = @transform_3, window_bounds = array<i64: 32, 32>}, {pipeline_mode = #tpu.pipeline_mode<synchronous>, transform_indices = @transform_4, window_bounds = array<i64: 1, 32>}, {pipeline_mode = #tpu.pipeline_mode<synchronous>, transform_indices = @transform_5, window_bounds = array<i64: 32, 32>}, {pipeline_mode = #tpu.pipeline_mode<synchronous>, transform_indices = @transform_6, window_bounds = array<i64: 1, 32>}, {pipeline_mode = #tpu.pipeline_mode<synchronous>, transform_indices = @transform_7, window_bounds = array<i64: 1, 32>}, {transform_indices = @transform_8, window_bounds = array<i64: 1, 1>}, {transform_indices = @transform_9, window_bounds = array<i64: 1, 128>}]} {
    %c0 = arith.constant 0 : index
    %c0_0 = arith.constant 0 : index
    %0 = vector.load %arg1[%c0, %c0_0] : memref<128x1024xf32, #tpu.memory_space<vmem>>, vector<128x1024xf32>
    %1 = arith.truncf %0 : vector<128x1024xf32> to vector<128x1024xbf16>
    %c0_1 = arith.constant 0 : index
    %c0_2 = arith.constant 0 : index
    %2 = vector.load %arg2[%c0_1, %c0_2] : memref<1024x32xbf16, #tpu.memory_space<vmem>>, vector<1024x32xbf16>
    %cst = arith.constant dense<0.000000e+00> : vector<128x32xf32>
    %3 = tpu.matmul %1, %2, %cst {dimension_numbers = #tpu.dot_dimension_numbers<[1], [0], [0], [1], [0, 0, 1, 1], [], []>} : vector<128x1024xbf16>, vector<1024x32xbf16>, vector<128x32xf32> -> vector<128x32xf32>
    %c0_3 = arith.constant 0 : index
    %c0_4 = arith.constant 0 : index
    %4 = vector.load %arg3[%c0_3, %c0_4] : memref<1x32xf32, #tpu.memory_space<vmem>>, vector<1x32xf32>
    %5 = vector.broadcast %4 : vector<1x32xf32> to vector<128x32xf32>
    %6 = arith.addf %3, %5 : vector<128x32xf32>
    %cst_5 = arith.constant 0.000000e+00 : f32
    %7 = vector.broadcast %cst_5 : f32 to vector<128x32xf32>
    %8 = arith.maximumf %6, %7 : vector<128x32xf32>
    %9 = arith.truncf %8 : vector<128x32xf32> to vector<128x32xbf16>
    %c0_6 = arith.constant 0 : index
    %c0_7 = arith.constant 0 : index
    %10 = vector.load %arg4[%c0_6, %c0_7] : memref<32x32xbf16, #tpu.memory_space<vmem>>, vector<32x32xbf16>
    %cst_8 = arith.constant dense<0.000000e+00> : vector<128x32xf32>
    %11 = tpu.matmul %9, %10, %cst_8 {dimension_numbers = #tpu.dot_dimension_numbers<[1], [0], [0], [1], [0, 0, 1, 1], [], []>} : vector<128x32xbf16>, vector<32x32xbf16>, vector<128x32xf32> -> vector<128x32xf32>
    %c0_9 = arith.constant 0 : index
    %c0_10 = arith.constant 0 : index
    %12 = vector.load %arg5[%c0_9, %c0_10] : memref<1x32xf32, #tpu.memory_space<vmem>>, vector<1x32xf32>
    %13 = vector.broadcast %12 : vector<1x32xf32> to vector<128x32xf32>
    %14 = arith.addf %11, %13 : vector<128x32xf32>
    %cst_11 = arith.constant 0.000000e+00 : f32
    %15 = vector.broadcast %cst_11 : f32 to vector<128x32xf32>
    %16 = arith.maximumf %14, %15 : vector<128x32xf32>
    %17 = arith.truncf %16 : vector<128x32xf32> to vector<128x32xbf16>
    %c0_12 = arith.constant 0 : index
    %c0_13 = arith.constant 0 : index
    %18 = vector.load %arg6[%c0_12, %c0_13] : memref<32x32xbf16, #tpu.memory_space<vmem>>, vector<32x32xbf16>
    %cst_14 = arith.constant dense<0.000000e+00> : vector<128x32xf32>
    %19 = tpu.matmul %17, %18, %cst_14 {dimension_numbers = #tpu.dot_dimension_numbers<[1], [0], [0], [1], [0, 0, 1, 1], [], []>} : vector<128x32xbf16>, vector<32x32xbf16>, vector<128x32xf32> -> vector<128x32xf32>
    %c0_15 = arith.constant 0 : index
    %c0_16 = arith.constant 0 : index
    %20 = vector.load %arg7[%c0_15, %c0_16] : memref<1x32xf32, #tpu.memory_space<vmem>>, vector<1x32xf32>
    %21 = vector.broadcast %20 : vector<1x32xf32> to vector<128x32xf32>
    %22 = arith.addf %19, %21 : vector<128x32xf32>
    %cst_17 = arith.constant 0.000000e+00 : f32
    %23 = vector.broadcast %cst_17 : f32 to vector<128x32xf32>
    %24 = arith.maximumf %22, %23 : vector<128x32xf32>
    %c0_18 = arith.constant 0 : index
    %c0_19 = arith.constant 0 : index
    %25 = vector.load %arg8[%c0_18, %c0_19] : memref<1x32xf32, #tpu.memory_space<vmem>>, vector<1x32xf32>
    %26 = vector.broadcast %25 : vector<1x32xf32> to vector<128x32xf32>
    %27 = arith.mulf %24, %26 : vector<128x32xf32>
    %cst_20 = arith.constant dense<0.000000e+00> : vector<128xf32>
    %28 = vector.multi_reduction <add>, %27, %cst_20 [1] : vector<128x32xf32> to vector<128xf32>
    %29 = vector.shape_cast %28 : vector<128xf32> to vector<128x1xf32>
    %c0_21 = arith.constant 0 : index
    %c0_22 = arith.constant 0 : index
    %30 = memref.load %arg9[%c0_21, %c0_22] : memref<1x1xf32, #tpu.memory_space<smem>>
    %31 = vector.broadcast %30 : f32 to vector<128x1xf32>
    %32 = arith.addf %29, %31 : vector<128x1xf32>
    %33 = vector.shape_cast %32 : vector<128x1xf32> to vector<1x128xf32>
    %c0_23 = arith.constant 0 : index
    %c0_24 = arith.constant 0 : index
    %34 = vector.load %arg10[%c0_23, %c0_24] : memref<1x128xf32, #tpu.memory_space<vmem>>, vector<1x128xf32>
    tpu.vector_store %arg10[%c0_23, %c0_24], %33 {strides = array<i32>} : memref<1x128xf32, #tpu.memory_space<vmem>>, vector<1x128xf32>,
    return
  }
  func.func @transform_0(%arg0: i32) -> (i32, i32) {
    %c0_i32 = arith.constant 0 : i32
    %c0_i32_0 = arith.constant 0 : i32
    return %arg0, %c0_i32 : i32, i32
  }
  func.func @transform_1(%arg0: i32) -> (i32, i32) {
    %c0_i32 = arith.constant 0 : i32
    %c0_i32_0 = arith.constant 0 : i32
    %c0_i32_1 = arith.constant 0 : i32
    return %c0_i32, %c0_i32_0 : i32, i32
  }
  func.func @transform_2(%arg0: i32) -> (i32, i32) {
    %c0_i32 = arith.constant 0 : i32
    %c0_i32_0 = arith.constant 0 : i32
    %c0_i32_1 = arith.constant 0 : i32
    return %c0_i32, %c0_i32_0 : i32, i32
  }
  func.func @transform_3(%arg0: i32) -> (i32, i32) {
    %c0_i32 = arith.constant 0 : i32
    %c0_i32_0 = arith.constant 0 : i32
    %c0_i32_1 = arith.constant 0 : i32
    return %c0_i32, %c0_i32_0 : i32, i32
  }
  func.func @transform_4(%arg0: i32) -> (i32, i32) {
    %c0_i32 = arith.constant 0 : i32
    %c0_i32_0 = arith.constant 0 : i32
    %c0_i32_1 = arith.constant 0 : i32
    return %c0_i32, %c0_i32_0 : i32, i32
  }
  func.func @transform_5(%arg0: i32) -> (i32, i32) {
    %c0_i32 = arith.constant 0 : i32
    %c0_i32_0 = arith.constant 0 : i32
    %c0_i32_1 = arith.constant 0 : i32
    return %c0_i32, %c0_i32_0 : i32, i32
  }
  func.func @transform_6(%arg0: i32) -> (i32, i32) {
    %c0_i32 = arith.constant 0 : i32
    %c0_i32_0 = arith.constant 0 : i32
    %c0_i32_1 = arith.constant 0 : i32
    return %c0_i32, %c0_i32_0 : i32, i32
  }
  func.func @transform_7(%arg0: i32) -> (i32, i32) {
    %c0_i32 = arith.constant 0 : i32
    %c0_i32_0 = arith.constant 0 : i32
    %c0_i32_1 = arith.constant 0 : i32
    return %c0_i32, %c0_i32_0 : i32, i32
  }
  func.func @transform_8(%arg0: i32) -> (i32, i32) {
    %c0_i32 = arith.constant 0 : i32
    %c0_i32_0 = arith.constant 0 : i32
    %c0_i32_1 = arith.constant 0 : i32
    return %c0_i32, %c0_i32_0 : i32, i32
  }
  func.func @transform_9(%arg0: i32) -> (i32, i32) {
    %c0_i32 = arith.constant 0 : i32
    %c0_i32_0 = arith.constant 0 : i32
    return %arg0, %c0_i32 : i32, i32
  }
}

</mosaic_0001>

<bundles_post_ra>
// kernel: tpu_custom_call.1
= control target key start
LH: loop header
LB: loop body
LE: loop exit
PB: predicated region body
PF: predicated region fallthrough
CT: control target
= control target key end

     0   :  { %v298_v30 = vlaneseq  ;;  %v3817_v33 = vmov 1983009808   ;;  %s4817_s0 = inlined_call_operand.vmem [shape: f32[2,1024], index: 0, kind: input, shape index: {}]   ;;  %s4818_s1 = inlined_call_operand.vmem [shape: bf16[1024,32], index: 1, kind: input, shape index: {}]   ;;  %s4819_s2 = inlined_call_operand.vmem [shape: f32[1,32], index: 2, kind: input, shape index: {}]   ;;  %s4820_s3 = inlined_call_operand.vmem [shape: bf16[32,32], index: 3, kind: input, shape index: {}]   ;;  %s4821_s4 = inlined_call_operand.vmem [shape: f32[1,32], index: 4, kind: input, shape index: {}]   ;;  %s4822_s5 = inlined_call_operand.vmem [shape: bf16[32,32], index: 5, kind: input, shape index: {}]   ;;  %s4823_s6 = inlined_call_operand.vmem [shape: f32[1,32], index: 6, kind: input, shape index: {}]   ;;  %s4824_s7 = inlined_call_operand.vmem [shape: f32[1,32], index: 7, kind: input, shape index: {}]   ;;  %s4825_s8 = inlined_call_operand.<no memory space> [shape: f32[1,1], index: 8, kind: input, shape index: {}]   ;;  %s4826_s9 = inlined_call_operand.hbm [shape: f32[1,128], index: 9, kind: output, shape index: {}]  }
   0x1   :  { %v3533_v0 = vld [vmem:[%s4818_s1 + $0x40] sm:$0xff]   ;;  %v3537_v4 = vld [vmem:[%s4818_s1 + $0x48] sm:$0xff]   ;;  %v3541_v8 = vld [vmem:[%s4818_s1 + $0x50] sm:$0xff]   ;;  %v296_v34 = vunpack.c.l.s4 %v3817_v33 }
   0x2   :  { %v3534_v1 = vld [vmem:[%s4818_s1 + $0xc0] sm:$0xff]   ;;  %3215 = vmatprep.subr.bf16.mxu0 %v3533_v0  ;;  %v3538_v5 = vld [vmem:[%s4818_s1 + $0xc8] sm:$0xff]   ;;  %v3542_v9 = vld [vmem:[%s4818_s1 + $0xd0] sm:$0xff]   ;;  %v3966_v35 = vshrl.u32 %v298_v30, 7 }
   0x3   :  { %v3535_v2 = vld [vmem:[%s4818_s1] sm:$0xff]   ;;  %3279 = vmatprep.subr.bf16.mxu1 %v3534_v1  ;;  %v3539_v6 = vld [vmem:[%s4818_s1 + $0x8] sm:$0xff]   ;;  %v3543_v10 = vld [vmem:[%s4818_s1 + $0x10] sm:$0xff]   ;;  %v297_v38 = vunpack.c.0.s8 %v296_v34 }
   0x4   :  { %v3536_v3 = vld [vmem:[%s4818_s1 + $0x80] sm:$0xff]   ;;  %3216 = vmatpush3.bf16.msra.mxu0 %v3535_v2  ;;  %v3540_v7 = vld [vmem:[%s4818_s1 + $0x88] sm:$0xff]   ;;  %v3544_v11 = vld [vmem:[%s4818_s1 + $0x90] sm:$0xff]  }
   0x5   :  { %3280 = vmatpush3.bf16.msra.mxu1 %v3536_v3  ;;  %3217 = vmatprep.subr.bf16.mxu0 %v3537_v4  ;;  %v3545_v12 = vld [vmem:[%s4818_s1 + $0x58] sm:$0xff]   ;;  %v3549_v16 = vld [vmem:[%s4818_s1 + $0x60] sm:$0xff]   ;;  %v3553_v20 = vld [vmem:[%s4818_s1 + $0x68] sm:$0xff]   ;;  %v3990_v44 = vsub.s32 %v297_v38, %v3966_v35 }
   0x6   :  { %3281 = vmatprep.subr.bf16.mxu1 %v3538_v5  ;;  %v3546_v13 = vld [vmem:[%s4818_s1 + $0xd8] sm:$0xff]   ;;  %v3550_v17 = vld [vmem:[%s4818_s1 + $0xe0] sm:$0xff]   ;;  %v3554_v21 = vld [vmem:[%s4818_s1 + $0xe8] sm:$0xff]  }
   0x7   :  { %v3547_v14 = vld [vmem:[%s4818_s1 + $0x18] sm:$0xff]   ;;  %v3551_v18 = vld [vmem:[%s4818_s1 + $0x20] sm:$0xff]   ;;  %v3555_v22 = vld [vmem:[%s4818_s1 + $0x28] sm:$0xff]  }
   0x8   :  { %3218 = vmatpush3.bf16.msra.mxu0 %v3539_v6  ;;  %v3548_v15 = vld [vmem:[%s4818_s1 + $0x98] sm:$0xff]   ;;  %v3552_v19 = vld [vmem:[%s4818_s1 + $0xa0] sm:$0xff]   ;;  %v3556_v23 = vld [vmem:[%s4818_s1 + $0xa8] sm:$0xff]  }
   0x9   :  { %3282 = vmatpush3.bf16.msra.mxu1 %v3540_v7  ;;  %3219 = vmatprep.subr.bf16.mxu0 %v3541_v8  ;;  %v3557_v24 = vld [vmem:[%s4818_s1 + $0x70] sm:$0xff]   ;;  %v3561_v28 = vld [vmem:[%s4818_s1 + $0x78] sm:$0xff]   ;;  %v3577_v46 = vld [vmem:[%s4818_s1 + $0x140] sm:$0xff]  }
   0xa   :  { %3283 = vmatprep.subr.bf16.mxu1 %v3542_v9  ;;  %v3558_v25 = vld [vmem:[%s4818_s1 + $0xf0] sm:$0xff]   ;;  %v3562_v29 = vld [vmem:[%s4818_s1 + $0xf8] sm:$0xff]   ;;  %v3579_v55 = vld [vmem:[%s4818_s1 + $0x1c0] sm:$0xff]  }
   0xb   :  { %v3559_v26 = vld [vmem:[%s4818_s1 + $0x30] sm:$0xff]   ;;  %v3563_v31 = vld [vmem:[%s4818_s1 + $0x38] sm:$0xff]   ;;  %v3578_v60 = vld [vmem:[%s4818_s1 + $0x100] sm:$0xff]  }
   0xc   :  { %3220 = vmatpush3.bf16.msra.mxu0 %v3543_v10  ;;  %v3560_v27 = vld [vmem:[%s4818_s1 + $0xb0] sm:$0xff]   ;;  %v3564_v32 = vld [vmem:[%s4818_s1 + $0xb8] sm:$0xff]   ;;  %v3580_v1 = vld [vmem:[%s4818_s1 + $0x180] sm:$0xff]  }
   0xd   :  { %3284 = vmatpush3.bf16.msra.mxu1 %v3544_v11  ;;  %3221 = vmatprep.subr.bf16.mxu0 %v3545_v12  ;;  %v3565_v36 = vld [vmem:[%s4817_s0] ss:$16 sps:$4 sm:$0xff]   ;;  %v3573_v41 = vld [vmem:[%s4817_s0 + $0x4] ss:$16 sps:$4 sm:$0xff]   ;;  %v3596_v34 = vld [vmem:[%s4818_s1 + $0x188] sm:$0xff]  }
   0xe   :  { %3285 = vmatprep.subr.bf16.mxu1 %v3546_v13  ;;  %v3567_v37 = vld [vmem:[%s4817_s0 + $0x20] ss:$16 sps:$4 sm:$0xff]   ;;  %v3574_v42 = vld [vmem:[%s4817_s0 + $0x24] ss:$16 sps:$4 sm:$0xff]   ;;  %v301_v47 = vrot.slane %v3565_v36, %v3990_v44  ;;  %v308_v51 = vrot.slane %v3573_v41, %v3990_v44 }
   0xf   :  { %v3569_v39 = vld [vmem:[%s4817_s0 + $0x40] ss:$16 sps:$4 sm:$0xff]   ;;  %v3575_v43 = vld [vmem:[%s4817_s0 + $0x44] ss:$16 sps:$4 sm:$0xff]   ;;  %v315_v48 = vrot.slane %v3567_v37, %v3990_v44  ;;  %v322_v52 = vrot.slane %v3574_v42, %v3990_v44 }
  0x10   :  { %3222 = vmatpush3.bf16.msra.mxu0 %v3547_v14  ;;  %v3571_v40 = vld [vmem:[%s4817_s0 + $0x60] ss:$16 sps:$4 sm:$0xff]   ;;  %v3576_v45 = vld [vmem:[%s4817_s0 + $0x64] ss:$16 sps:$4 sm:$0xff]   ;;  %v373_v49 = vrot.slane %v3569_v39, %v3990_v44  ;;  %v380_v53 = vrot.slane %v3575_v43, %v3990_v44 }
  0x11   :  { %3286 = vmatpush3.bf16.msra.mxu1 %v3548_v15  ;;  %3223 = vmatprep.subr.bf16.mxu0 %v3549_v16  ;;  %v387_v50 = vrot.slane %v3571_v40, %v3990_v44  ;;  %v394_v54 = vrot.slane %v3576_v45, %v3990_v44  ;;  %v324_v56 = vcombine.high %v301_v47, %v315_v48  ;;  %v3581_v6 = vld [vmem:[%s4817_s0 + $0x80] ss:$16 sps:$4 sm:$0xff]   ;;  %v3589_v10 = vld [vmem:[%s4817_s0 + $0x84] ss:$16 sps:$4 sm:$0xff]  }
  0x12   :  { %3287 = vmatprep.subr.bf16.mxu1 %v3550_v17  ;;  %v323_v58 = vcombine.low %v301_v47, %v315_v48  ;;  %v326_v61 = vcombine.high %v308_v51, %v322_v52  ;;  %v325_v63 = vcombine.low %v308_v51, %v322_v52  ;;  %v3583_v7 = vld [vmem:[%s4817_s0 + $0xa0] ss:$16 sps:$4 sm:$0xff]   ;;  %v3590_v11 = vld [vmem:[%s4817_s0 + $0xa4] ss:$16 sps:$4 sm:$0xff]   ;;  %v445_v12 = vrot.slane %v3581_v6, %v3990_v44 }
  0x13   :  { %v396_v57 = vcombine.high %v373_v49, %v387_v50  ;;  %v395_v59 = vcombine.low %v373_v49, %v387_v50  ;;  %v398_v62 = vcombine.high %v380_v53, %v394_v54  ;;  %v397_v0 = vcombine.low %v380_v53, %v394_v54  ;;  %v3585_v8 = vld [vmem:[%s4817_s0 + $0xc0] ss:$16 sps:$4 sm:$0xff]   ;;  %v3591_v15 = vld [vmem:[%s4817_s0 + $0xc4] ss:$16 sps:$4 sm:$0xff]  }
  0x14   :  { %3224 = vmatpush3.bf16.msra.mxu0 %v3551_v18  ;;  %v3587_v9 = vld [vmem:[%s4817_s0 + $0xe0] ss:$16 sps:$4 sm:$0xff]   ;;  %v459_v13 = vrot.slane %v3583_v7, %v3990_v44  ;;  %v517_v14 = vrot.slane %v3585_v8, %v3990_v44  ;;  %v3592_v16 = vld [vmem:[%s4817_s0 + $0xe4] ss:$16 sps:$4 sm:$0xff]   ;;  %v452_v18 = vrot.slane %v3589_v10, %v3990_v44 }
  0x15   :  { %3288 = vmatpush3.bf16.msra.mxu1 %v3552_v19  ;;  %3225 = vmatprep.subr.bf16.mxu0 %v3553_v20  ;;  %v1572_v2 = vpack.c.bf16 %v396_v57, %v324_v56  ;;  %v1571_v3 = vpack.c.bf16 %v395_v59, %v323_v58  ;;  %v1574_v4 = vpack.c.bf16 %v398_v62, %v326_v61  ;;  %v3593_v20 = vld [vmem:[%s4818_s1 + $0x148] sm:$0xff]   ;;  %v3597_v40 = vld [vmem:[%s4817_s0 + $0x100] ss:$16 sps:$4 sm:$0xff]   ;;  %v3605_v45 = vld [vmem:[%s4817_s0 + $0x104] ss:$16 sps:$4 sm:$0xff]  }
  0x16   :  { %3289 = vmatprep.subr.bf16.mxu1 %v3554_v21  ;;  %v1573_v5 = vpack.c.bf16 %v397_v0, %v325_v63  ;;  %v531_v17 = vrot.slane %v3587_v9, %v3990_v44  ;;  %v466_v19 = vrot.slane %v3590_v11, %v3990_v44  ;;  %v468_v21 = vcombine.high %v445_v12, %v459_v13  ;;  %v3599_v41 = vld [vmem:[%s4817_s0 + $0x120] ss:$16 sps:$4 sm:$0xff]   ;;  %v3606_v48 = vld [vmem:[%s4817_s0 + $0x124] ss:$16 sps:$4 sm:$0xff]  }
  0x17   :  { %2186 = vmatprep.mubr.bf16.mxu0 %v1572_v2  ;;  %2283 = vmatprep.mubr.bf16.mxu1 %v1574_v4  ;;  %v3601_v42 = vld [vmem:[%s4817_s0 + $0x140] ss:$16 sps:$4 sm:$0xff]   ;;  %v603_v47 = vrot.slane %v3599_v41, %v3990_v44  ;;  %v3607_v49 = vld [vmem:[%s4817_s0 + $0x144] ss:$16 sps:$4 sm:$0xff]   ;;  %v596_v53 = vrot.slane %v3605_v45, %v3990_v44  ;;  %v610_v56 = vrot.slane %v3606_v48, %v3990_v44 }
  0x18   :  { %3226 = vmatpush3.bf16.msra.mxu0 %v3555_v22  ;;  %v524_v22 = vrot.slane %v3591_v15, %v3990_v44  ;;  %v3603_v43 = vld [vmem:[%s4817_s0 + $0x160] ss:$16 sps:$4 sm:$0xff]   ;;  %v3608_v50 = vld [vmem:[%s4817_s0 + $0x164] ss:$16 sps:$4 sm:$0xff]   ;;  %v661_v51 = vrot.slane %v3601_v42, %v3990_v44  ;;  %v668_v57 = vrot.slane %v3607_v49, %v3990_v44 }
  0x19   :  { %3290 = vmatpush3.bf16.msra.mxu1 %v3556_v23  ;;  %3227 = vmatprep.subr.bf16.mxu0 %v3557_v24  ;;  %v538_v23 = vrot.slane %v3592_v16, %v3990_v44  ;;  %v467_v24 = vcombine.low %v445_v12, %v459_v13  ;;  %v675_v52 = vrot.slane %v3603_v43, %v3990_v44  ;;  %v3609_v54 = vld [vmem:[%s4818_s1 + $0x150] sm:$0xff]  }
  0x1a   :  { %3291 = vmatprep.subr.bf16.mxu1 %v3558_v25  ;;  %v3594_v25 = vld [vmem:[%s4818_s1 + $0x108] sm:$0xff]   ;;  %v682_v58 = vrot.slane %v3608_v50, %v3990_v44  ;;  %v3610_v59 = vld [vmem:[%s4818_s1 + $0x110] sm:$0xff]   ;;  %v614_v0 = vcombine.high %v596_v53, %v610_v56  ;;  %v613_v2 = vcombine.low %v596_v53, %v610_v56 }
  0x1b   :  { %v541_v33 = vcombine.low %v524_v22, %v538_v23  ;;  %v683_v62 = vcombine.low %v661_v51, %v675_v52  ;;  %v3611_v63 = vld [vmem:[%s4818_s1 + $0x1d0] sm:$0xff]  }
  0x1c   :  { %3228 = vmatpush3.bf16.msra.mxu0 %v3559_v26  ;;  %v540_v26 = vcombine.high %v517_v14, %v531_v17  ;;  %v3612_v4 = vld [vmem:[%s4818_s1 + $0x190] sm:$0xff]  }
  0x1d   :  { %3292 = vmatpush3.bf16.msra.mxu1 %v3560_v27  ;;  %3229 = vmatprep.subr.bf16.mxu0 %v3561_v28  ;;  %v470_v27 = vcombine.high %v452_v18, %v466_v19  ;;  %v539_v28 = vcombine.low %v517_v14, %v531_v17  ;;  %v3613_v9 = vld [vmem:[%s4817_s0 + $0x180] ss:$16 sps:$4 sm:$0xff]   ;;  %v3621_v14 = vld [vmem:[%s4817_s0 + $0x184] ss:$16 sps:$4 sm:$0xff]  }
  0x1e   :  { %3293 = vmatprep.subr.bf16.mxu1 %v3562_v29  ;;  %v469_v29 = vcombine.low %v452_v18, %v466_v19  ;;  %v1580_v36 = vpack.c.bf16 %v540_v26, %v468_v21  ;;  %v3615_v10 = vld [vmem:[%s4817_s0 + $0x1a0] ss:$16 sps:$4 sm:$0xff]   ;;  %v733_v13 = vrot.slane %v3613_v9, %v3990_v44  ;;  %v3622_v15 = vld [vmem:[%s4817_s0 + $0x1a4] ss:$16 sps:$4 sm:$0xff]   ;;  %v740_v21 = vrot.slane %v3621_v14, %v3990_v44 }
  0x1f   :  { %v1579_v37 = vpack.c.bf16 %v539_v28, %v467_v24  ;;  %v3617_v11 = vld [vmem:[%s4817_s0 + $0x1c0] ss:$16 sps:$4 sm:$0xff]   ;;  %v3623_v16 = vld [vmem:[%s4817_s0 + $0x1c4] ss:$16 sps:$4 sm:$0xff]   ;;  %v747_v17 = vrot.slane %v3615_v10, %v3990_v44  ;;  %v3625_v24 = vld [vmem:[%s4818_s1 + $0x158] sm:$0xff]  }
  0x20   :  { %3230 = vmatpush3.bf16.msra.mxu0 %v3563_v31  ;;  %v3595_v31 = vld [vmem:[%s4818_s1 + $0x1c8] sm:$0xff]   ;;  %v1581_v39 = vpack.c.bf16 %v541_v33, %v469_v29  ;;  %v3619_v12 = vld [vmem:[%s4817_s0 + $0x1e0] ss:$16 sps:$4 sm:$0xff]   ;;  %v805_v18 = vrot.slane %v3617_v11, %v3990_v44  ;;  %v3626_v29 = vld [vmem:[%s4818_s1 + $0x118] sm:$0xff]  }
  0x21   :  { %3294 = vmatpush3.bf16.msra.mxu1 %v3564_v32  ;;  %3343 = vmatprep.subr.bf16.mxu0 %v3577_v46  ;;  %v542_v32 = vcombine.high %v524_v22, %v538_v23  ;;  %v589_v46 = vrot.slane %v3597_v40, %v3990_v44  ;;  %v819_v19 = vrot.slane %v3619_v12, %v3990_v44  ;;  %v3629_v43 = vld [vmem:[%s4817_s0 + $0x200] ss:$16 sps:$4 sm:$0xff]   ;;  %v3637_v48 = vld [vmem:[%s4817_s0 + $0x204] ss:$16 sps:$4 sm:$0xff]  }
  0x22   :  { %3407 = vmatprep.subr.bf16.mxu1 %v3579_v55  ;;  %v754_v22 = vrot.slane %v3622_v15, %v3990_v44  ;;  %v812_v23 = vrot.slane %v3623_v16, %v3990_v44  ;;  %v755_v28 = vcombine.low %v733_v13, %v747_v17  ;;  %v3631_v45 = vld [vmem:[%s4817_s0 + $0x220] ss:$16 sps:$4 sm:$0xff]   ;;  %v3638_v49 = vld [vmem:[%s4817_s0 + $0x224] ss:$16 sps:$4 sm:$0xff]   ;;  %v877_v50 = vrot.slane %v3629_v43, %v3990_v44 }
  0x23   :  { %2187 = vmatmul.mubr.bf16.vlgmr.msra.gmra.mrb[0].mxu0 %v1571_v3  ;;  %v1582_v38 = vpack.c.bf16 %v542_v32, %v470_v27  ;;  %v612_v55 = vcombine.high %v589_v46, %v603_v47  ;;  %v611_v61 = vcombine.low %v589_v46, %v603_v47  ;;  %v685_v3 = vcombine.low %v668_v57, %v682_v58  ;;  %v3633_v46 = vld [vmem:[%s4817_s0 + $0x240] ss:$16 sps:$4 sm:$0xff]   ;;  %v3639_v53 = vld [vmem:[%s4817_s0 + $0x244] ss:$16 sps:$4 sm:$0xff]  }
  0x24   :  { %2284 = vmatmul.mubr.bf16.vlgmr.msra.gmra.mrb[0].mxu1 %v1573_v5  ;;  %3344 = vmatpush3.bf16.msra.mxu0 %v3578_v60  ;;  %v684_v60 = vcombine.high %v661_v51, %v675_v52  ;;  %v828_v26 = vcombine.high %v805_v18, %v819_v19  ;;  %v827_v32 = vcombine.low %v805_v18, %v819_v19  ;;  %v3635_v47 = vld [vmem:[%s4817_s0 + $0x260] ss:$16 sps:$4 sm:$0xff]   ;;  %v3653_v16 = vld [vmem:[%s4817_s0 + $0x284] ss:$16 sps:$4 sm:$0xff]  }
  0x25   :  { %3408 = vmatpush3.bf16.msra.mxu1 %v3580_v1  ;;  %3345 = vmatprep.subr.bf16.mxu0 %v3593_v20  ;;  %v686_v1 = vcombine.high %v668_v57, %v682_v58  ;;  %v1587_v6 = vpack.c.bf16 %v683_v62, %v611_v61  ;;  %v1589_v8 = vpack.c.bf16 %v685_v3, %v613_v2  ;;  %v3624_v20 = vld [vmem:[%s4817_s0 + $0x1e4] ss:$16 sps:$4 sm:$0xff]   ;;  %v3645_v12 = vld [vmem:[%s4817_s0 + $0x280] ss:$16 sps:$4 sm:$0xff]  }
  0x26   :  { %3409 = vmatprep.subr.bf16.mxu1 %v3595_v31  ;;  %2194 = vmatprep.mubr.bf16.mxu0 %v1580_v36  ;;  %v1588_v5 = vpack.c.bf16 %v684_v60, %v612_v55  ;;  %v826_v27 = vrot.slane %v3624_v20, %v3990_v44  ;;  %v758_v31 = vcombine.high %v740_v21, %v754_v22  ;;  %v3641_v58 = vld [vmem:[%s4818_s1 + $0x160] sm:$0xff]  }
  0x27   :  { %2291 = vmatprep.mubr.bf16.mxu1 %v1582_v38  ;;  %v1590_v7 = vpack.c.bf16 %v686_v1, %v614_v0  ;;  %v757_v33 = vcombine.low %v740_v21, %v754_v22  ;;  %v1595_v40 = vpack.c.bf16 %v827_v32, %v755_v28  ;;  %v891_v51 = vrot.slane %v3631_v45, %v3990_v44  ;;  %v3649_v14 = vld [vmem:[%s4817_s0 + $0x2c0] ss:$16 sps:$4 sm:$0xff]   ;;  %v3654_v19 = vld [vmem:[%s4817_s0 + $0x2a4] ss:$16 sps:$4 sm:$0xff]  }
  0x28   :  { %3346 = vmatpush3.bf16.msra.mxu0 %v3594_v25  ;;  %v756_v25 = vcombine.high %v733_v13, %v747_v17  ;;  %v829_v38 = vcombine.low %v812_v23, %v826_v27  ;;  %v949_v52 = vrot.slane %v3633_v46, %v3990_v44  ;;  %v963_v55 = vrot.slane %v3635_v47, %v3990_v44  ;;  %v3647_v13 = vld [vmem:[%s4817_s0 + $0x2a0] ss:$16 sps:$4 sm:$0xff]   ;;  %v3655_v20 = vld [vmem:[%s4817_s0 + $0x2c4] ss:$16 sps:$4 sm:$0xff]  }
  0x29   :  { %3410 = vmatpush3.bf16.msra.mxu1 %v3596_v34  ;;  %3347 = vmatprep.subr.bf16.mxu0 %v3609_v54  ;;  %v3627_v34 = vld [vmem:[%s4818_s1 + $0x1d8] sm:$0xff]   ;;  %v3640_v54 = vld [vmem:[%s4817_s0 + $0x264] ss:$16 sps:$4 sm:$0xff]   ;;  %v884_v56 = vrot.slane %v3637_v48, %v3990_v44  ;;  %v898_v57 = vrot.slane %v3638_v49, %v3990_v44  ;;  %v956_v60 = vrot.slane %v3639_v53, %v3990_v44  ;;  %v3651_v15 = vld [vmem:[%s4817_s0 + $0x2e0] ss:$16 sps:$4 sm:$0xff]  }
  0x2a   :  { %3411 = vmatprep.subr.bf16.mxu1 %v3611_v63  ;;  %v1596_v36 = vpack.c.bf16 %v828_v26, %v756_v25  ;;  %v1597_v42 = vpack.c.bf16 %v829_v38, %v757_v33  ;;  %v970_v61 = vrot.slane %v3640_v54, %v3990_v44  ;;  %v899_v62 = vcombine.low %v877_v50, %v891_v51  ;;  %v3642_v63 = vld [vmem:[%s4818_s1 + $0x120] sm:$0xff]   ;;  %v3657_v25 = vld [vmem:[%s4818_s1 + $0x168] sm:$0xff]  }
  0x2b   :  { %2195 = vmatmul.mubr.bf16.gmra.mrb[4].mxu0 %v1579_v37  ;;  %v830_v37 = vcombine.high %v812_v23, %v826_v27  ;;  %v972_v0 = vcombine.high %v949_v52, %v963_v55  ;;  %v902_v1 = vcombine.high %v884_v56, %v898_v57  ;;  %v971_v2 = vcombine.low %v949_v52, %v963_v55  ;;  %v3656_v21 = vld [vmem:[%s4817_s0 + $0x2e4] ss:$16 sps:$4 sm:$0xff]   ;;  %v3661_v47 = vld [vmem:[%s4817_s0 + $0x300] ss:$16 sps:$4 sm:$0xff]  }
  0x2c   :  { %2292 = vmatmul.mubr.bf16.gmra.mrb[4].mxu1 %v1581_v39  ;;  %3348 = vmatpush3.bf16.msra.mxu0 %v3610_v59  ;;  %v3628_v39 = vld [vmem:[%s4818_s1 + $0x198] sm:$0xff]   ;;  %v900_v59 = vcombine.high %v877_v50, %v891_v51  ;;  %v901_v3 = vcombine.low %v884_v56, %v898_v57  ;;  %v1021_v17 = vrot.slane %v3645_v12, %v3990_v44  ;;  %v3663_v48 = vld [vmem:[%s4817_s0 + $0x320] ss:$16 sps:$4 sm:$0xff]   ;;  %v3669_v52 = vld [vmem:[%s4817_s0 + $0x304] ss:$16 sps:$4 sm:$0xff]  }
  0x2d   :  { %3412 = vmatpush3.bf16.msra.mxu1 %v3612_v4  ;;  %2202 = vmatprep.mubr.bf16.mxu0 %v1588_v5  ;;  %v1598_v41 = vpack.c.bf16 %v830_v37, %v758_v31  ;;  %v3643_v4 = vld [vmem:[%s4818_s1 + $0x1e0] sm:$0xff]   ;;  %v974_v5 = vcombine.high %v956_v60, %v970_v61  ;;  %v1603_v9 = vpack.c.bf16 %v971_v2, %v899_v62  ;;  %v3658_v31 = vld [vmem:[%s4818_s1 + $0x128] sm:$0xff]   ;;  %v3673_v62 = vld [vmem:[%s4818_s1 + $0x170] sm:$0xff]  }
  0x2e   :  { %2299 = vmatprep.mubr.bf16.mxu1 %v1590_v7  ;;  %3349 = vmatprep.subr.bf16.mxu0 %v3625_v24  ;;  %v3644_v7 = vld [vmem:[%s4818_s1 + $0x1a0] sm:$0xff]   ;;  %v1035_v18 = vrot.slane %v3647_v13, %v3990_v44  ;;  %v1093_v22 = vrot.slane %v3649_v14, %v3990_v44  ;;  %v1107_v23 = vrot.slane %v3651_v15, %v3990_v44 }
  0x2f   :  { %3413 = vmatprep.subr.bf16.mxu1 %v3627_v34  ;;  %v1606_v10 = vpack.c.bf16 %v974_v5, %v902_v1  ;;  %v1028_v24 = vrot.slane %v3653_v16, %v3990_v44  ;;  %v1042_v27 = vrot.slane %v3654_v19, %v3990_v44  ;;  %v1100_v28 = vrot.slane %v3655_v20, %v3990_v44  ;;  %v3665_v49 = vld [vmem:[%s4817_s0 + $0x340] ss:$16 sps:$4 sm:$0xff]   ;;  %v3670_v53 = vld [vmem:[%s4817_s0 + $0x324] ss:$16 sps:$4 sm:$0xff]  }
  0x30   :  { %3350 = vmatpush3.bf16.msra.mxu0 %v3626_v29  ;;  %v1044_v26 = vcombine.high %v1021_v17, %v1035_v18  ;;  %v1114_v29 = vrot.slane %v3656_v21, %v3990_v44  ;;  %v1116_v32 = vcombine.high %v1093_v22, %v1107_v23  ;;  %v1043_v33 = vcombine.low %v1021_v17, %v1035_v18  ;;  %v3667_v50 = vld [vmem:[%s4817_s0 + $0x360] ss:$16 sps:$4 sm:$0xff]   ;;  %v3671_v54 = vld [vmem:[%s4817_s0 + $0x344] ss:$16 sps:$4 sm:$0xff]  }
  0x31   :  { %3414 = vmatpush3.bf16.msra.mxu1 %v3628_v39  ;;  %3351 = vmatprep.subr.bf16.mxu0 %v3641_v58  ;;  %v1115_v34 = vcombine.low %v1093_v22, %v1107_v23  ;;  %v1046_v37 = vcombine.high %v1028_v24, %v1042_v27  ;;  %v1045_v39 = vcombine.low %v1028_v24, %v1042_v27  ;;  %v3672_v58 = vld [vmem:[%s4817_s0 + $0x364] ss:$16 sps:$4 sm:$0xff]   ;;  %v3677_v15 = vld [vmem:[%s4817_s0 + $0x380] ss:$16 sps:$4 sm:$0xff]  }
  0x32   :  { %3415 = vmatprep.subr.bf16.mxu1 %v3643_v4  ;;  %v1118_v38 = vcombine.high %v1100_v28, %v1114_v29  ;;  %v1165_v51 = vrot.slane %v3661_v47, %v3990_v44  ;;  %v1179_v55 = vrot.slane %v3663_v48, %v3990_v44  ;;  %v1237_v56 = vrot.slane %v3665_v49, %v3990_v44  ;;  %v3679_v16 = vld [vmem:[%s4817_s0 + $0x3a0] ss:$16 sps:$4 sm:$0xff]   ;;  %v3685_v19 = vld [vmem:[%s4817_s0 + $0x384] ss:$16 sps:$4 sm:$0xff]  }
  0x33   :  { %2203 = vmatmul.mubr.bf16.gmra.mrb[8].mxu0 %v1587_v6  ;;  %v973_v6 = vcombine.low %v956_v60, %v970_v61  ;;  %v1611_v43 = vpack.c.bf16 %v1115_v34, %v1043_v33  ;;  %v1251_v57 = vrot.slane %v3667_v50, %v3990_v44  ;;  %v1186_v60 = vrot.slane %v3670_v53, %v3990_v44  ;;  %v3681_v17 = vld [vmem:[%s4817_s0 + $0x3c0] ss:$16 sps:$4 sm:$0xff]   ;;  %v3686_v20 = vld [vmem:[%s4817_s0 + $0x3a4] ss:$16 sps:$4 sm:$0xff]   ;;  %v3693_v50 = vld [vmem:[%s4817_s0 + $0x8] ss:$16 sps:$4 sm:$0xff]  }
  0x34   :  { %2300 = vmatmul.mubr.bf16.gmra.mrb[8].mxu1 %v1589_v8  ;;  %2210 = vmatprep.mubr.bf16.mxu0 %v1596_v36  ;;  %v1604_v8 = vpack.c.bf16 %v972_v0, %v900_v59  ;;  %v3659_v36 = vld [vmem:[%s4818_s1 + $0x1e8] sm:$0xff]   ;;  %v1614_v45 = vpack.c.bf16 %v1118_v38, %v1046_v37  ;;  %v1172_v59 = vrot.slane %v3669_v52, %v3990_v44  ;;  %v3683_v18 = vld [vmem:[%s4817_s0 + $0x3e0] ss:$16 sps:$4 sm:$0xff]   ;;  %v3687_v24 = vld [vmem:[%s4817_s0 + $0x3c4] ss:$16 sps:$4 sm:$0xff]  }
  0x35   :  { %2307 = vmatprep.mubr.bf16.mxu1 %v1598_v41  ;;  %3352 = vmatpush3.bf16.msra.mxu0 %v3642_v63  ;;  %v1605_v11 = vpack.c.bf16 %v973_v6, %v901_v3  ;;  %v3660_v41 = vld [vmem:[%s4818_s1 + $0x1a8] sm:$0xff]   ;;  %v1244_v61 = vrot.slane %v3671_v54, %v3990_v44  ;;  %v1188_v63 = vcombine.high %v1165_v51, %v1179_v55  ;;  %v3674_v3 = vld [vmem:[%s4818_s1 + $0x130] sm:$0xff]  }
  0x36   :  { %3416 = vmatpush3.bf16.msra.mxu1 %v3644_v7  ;;  %3353 = vmatprep.subr.bf16.mxu0 %v3657_v25  ;;  %v1260_v0 = vcombine.high %v1237_v56, %v1251_v57  ;;  %v1258_v1 = vrot.slane %v3672_v58, %v3990_v44  ;;  %v1187_v2 = vcombine.low %v1165_v51, %v1179_v55  ;;  %v3675_v7 = vld [vmem:[%s4818_s1 + $0x1f0] sm:$0xff]   ;;  %v3695_v51 = vld [vmem:[%s4817_s0 + $0x28] ss:$16 sps:$4 sm:$0xff]   ;;  %v3701_v54 = vld [vmem:[%s4817_s0 + $0xc] ss:$16 sps:$4 sm:$0xff]  }
  0x37   :  { %3417 = vmatprep.subr.bf16.mxu1 %v3659_v36  ;;  %v1190_v4 = vcombine.high %v1172_v59, %v1186_v60  ;;  %v1259_v5 = vcombine.low %v1237_v56, %v1251_v57  ;;  %v1189_v6 = vcombine.low %v1172_v59, %v1186_v60  ;;  %v1309_v21 = vrot.slane %v3677_v15, %v3990_v44  ;;  %v3688_v25 = vld [vmem:[%s4817_s0 + $0x3e4] ss:$16 sps:$4 sm:$0xff]   ;;  %v3690_v36 = vld [vmem:[%s4818_s1 + $0x138] sm:$0xff]  }
  0x38   :  { %v1323_v22 = vrot.slane %v3679_v16, %v3990_v44  ;;  %v1381_v23 = vrot.slane %v3681_v17, %v3990_v44  ;;  %v1316_v27 = vrot.slane %v3685_v19, %v3990_v44  ;;  %v1402_v33 = vrot.slane %v3688_v25, %v3990_v44  ;;  %v3697_v52 = vld [vmem:[%s4817_s0 + $0x48] ss:$16 sps:$4 sm:$0xff]   ;;  %v3702_v57 = vld [vmem:[%s4817_s0 + $0x2c] ss:$16 sps:$4 sm:$0xff]  }
  0x39   :  { %3354 = vmatpush3.bf16.msra.mxu0 %v3658_v31  ;;  %v1619_v12 = vpack.c.bf16 %v1259_v5, %v1187_v2  ;;  %v3699_v53 = vld [vmem:[%s4817_s0 + $0x68] ss:$16 sps:$4 sm:$0xff]   ;;  %v337_v55 = vrot.slane %v3693_v50, %v3990_v44  ;;  %v351_v56 = vrot.slane %v3695_v51, %v3990_v44  ;;  %v3703_v58 = vld [vmem:[%s4817_s0 + $0x4c] ss:$16 sps:$4 sm:$0xff]   ;;  %v409_v60 = vrot.slane %v3697_v52, %v3990_v44 }
  0x3a   :  { %3418 = vmatpush3.bf16.msra.mxu1 %v3660_v41  ;;  %3355 = vmatprep.subr.bf16.mxu0 %v3673_v62  ;;  %v1332_v31 = vcombine.high %v1309_v21, %v1323_v22  ;;  %v1331_v34 = vcombine.low %v1309_v21, %v1323_v22  ;;  %v3691_v41 = vld [vmem:[%s4818_s1 + $0x1f8] sm:$0xff]   ;;  %v344_v62 = vrot.slane %v3701_v54, %v3990_v44 }
  0x3b   :  { %2211 = vmatmul.mubr.bf16.gmra.mrb[12].mxu0 %v1595_v40  ;;  %v1117_v40 = vcombine.low %v1100_v28, %v1114_v29  ;;  %3419 = vmatprep.subr.bf16.mxu1 %v3675_v7  ;;  %v1330_v28 = vrot.slane %v3686_v20, %v3990_v44  ;;  %v3689_v29 = vld [vmem:[%s4818_s1 + $0x178] sm:$0xff]   ;;  %v416_v2 = vrot.slane %v3703_v58, %v3990_v44 }
  0x3c   :  { %2308 = vmatmul.mubr.bf16.gmra.mrb[12].mxu1 %v1597_v42  ;;  %2218 = vmatprep.mubr.bf16.mxu0 %v1604_v8  ;;  %v1612_v42 = vpack.c.bf16 %v1116_v32, %v1044_v26  ;;  %v1620_v8 = vpack.c.bf16 %v1260_v0, %v1188_v63  ;;  %v1395_v26 = vrot.slane %v3683_v18, %v3990_v44  ;;  %v3704_v59 = vld [vmem:[%s4817_s0 + $0x6c] ss:$16 sps:$4 sm:$0xff]  }
  0x3d   :  { %2315 = vmatprep.mubr.bf16.mxu1 %v1606_v10  ;;  %v1613_v46 = vpack.c.bf16 %v1117_v40, %v1045_v39  ;;  %v1261_v10 = vcombine.low %v1244_v61, %v1258_v1  ;;  %3356 = vmatpush3.bf16.msra.mxu0 %v3674_v3  ;;  %v1388_v32 = vrot.slane %v3687_v24, %v3990_v44  ;;  %v3713_v16 = vld [vmem:[%s4817_s0 + $0x8c] ss:$16 sps:$4 sm:$0xff]  }
  0x3e   :  { %v1404_v37 = vcombine.high %v1381_v23, %v1395_v26  ;;  %v1334_v38 = vcombine.high %v1316_v27, %v1330_v28  ;;  %v1403_v39 = vcombine.low %v1381_v23, %v1395_v26  ;;  %v1333_v40 = vcombine.low %v1316_v27, %v1330_v28  ;;  %3357 = vmatprep.subr.bf16.mxu0 %v3689_v29  ;;  %v3714_v17 = vld [vmem:[%s4817_s0 + $0xac] ss:$16 sps:$4 sm:$0xff]  }
  0x3f   :  { %v1621_v14 = vpack.c.bf16 %v1261_v10, %v1189_v6  ;;  %v359_v63 = vcombine.low %v337_v55, %v351_v56  ;;  %v360_v0 = vcombine.high %v337_v55, %v351_v56  ;;  %v430_v5 = vrot.slane %v3704_v59, %v3990_v44  ;;  %v3705_v6 = vld [vmem:[%s4817_s0 + $0x88] ss:$16 sps:$4 sm:$0xff]   ;;  %v3715_v18 = vld [vmem:[%s4817_s0 + $0xcc] ss:$16 sps:$4 sm:$0xff]  }
  0x40   :  { %v1627_v47 = vpack.c.bf16 %v1403_v39, %v1331_v34  ;;  %v3709_v10 = vld [vmem:[%s4817_s0 + $0xc8] ss:$16 sps:$4 sm:$0xff]   ;;  %v481_v19 = vrot.slane %v3705_v6, %v3990_v44  ;;  %v3716_v23 = vld [vmem:[%s4817_s0 + $0xec] ss:$16 sps:$4 sm:$0xff]   ;;  %v488_v26 = vrot.slane %v3713_v16, %v3990_v44  ;;  %v502_v27 = vrot.slane %v3714_v17, %v3990_v44 }
  0x41   :  { %3358 = vmatpush3.bf16.msra.mxu0 %v3690_v36  ;;  %v553_v21 = vrot.slane %v3709_v10, %v3990_v44  ;;  %v3721_v39 = vld [vmem:[%s4817_s0 + $0x148] ss:$16 sps:$4 sm:$0xff]   ;;  %v3727_v51 = vld [vmem:[%s4817_s0 + $0x14c] ss:$16 sps:$4 sm:$0xff]  }
  0x42   :  { %v697_v50 = vrot.slane %v3721_v39, %v3990_v44  ;;  %v3728_v52 = vld [vmem:[%s4817_s0 + $0x16c] ss:$16 sps:$4 sm:$0xff]   ;;  %v704_v59 = vrot.slane %v3727_v51, %v3990_v44  ;;  %v3735_v6 = vld [vmem:[%s4817_s0 + $0x1e8] ss:$16 sps:$4 sm:$0xff]  }
  0x43   :  { %2219 = vmatmul.mubr.bf16.gmra.mrb[16].mxu0 %v1603_v9  ;;  %v1262_v9 = vcombine.high %v1244_v61, %v1258_v1  ;;  %v423_v61 = vrot.slane %v3699_v53, %v3990_v44  ;;  %v358_v1 = vrot.slane %v3702_v57, %v3990_v44  ;;  %v3751_v39 = vld [vmem:[%s4817_s0 + $0x24c] ss:$16 sps:$4 sm:$0xff]  }
  0x44   :  { %2316 = vmatmul.mubr.bf16.gmra.mrb[16].mxu1 %v1605_v11  ;;  %2226 = vmatprep.mubr.bf16.mxu0 %v1612_v42  ;;  %v3676_v11 = vld [vmem:[%s4818_s1 + $0x1b0] sm:$0xff]   ;;  %v1406_v42 = vcombine.high %v1388_v32, %v1402_v33 }
  0x45   :  { %2323 = vmatprep.mubr.bf16.mxu1 %v1614_v45  ;;  %v1622_v13 = vpack.c.bf16 %v1262_v9, %v1190_v4  ;;  %3420 = vmatpush3.bf16.msra.mxu1 %v3676_v11  ;;  %v3692_v45 = vld [vmem:[%s4818_s1 + $0x1b8] sm:$0xff]   ;;  %v431_v3 = vcombine.low %v409_v60, %v423_v61  ;;  %v432_v4 = vcombine.high %v409_v60, %v423_v61 }
  0x46   :  { %3421 = vmatprep.subr.bf16.mxu1 %v3691_v41  ;;  %v1630_v48 = vpack.c.bf16 %v1406_v42, %v1334_v38  ;;  %v361_v7 = vcombine.low %v344_v62, %v358_v1  ;;  %v3707_v9 = vld [vmem:[%s4817_s0 + $0xa8] ss:$16 sps:$4 sm:$0xff]   ;;  %v505_v42 = vcombine.low %v488_v26, %v502_v27  ;;  %v718_v60 = vrot.slane %v3728_v52, %v3990_v44 }
  0x47   :  { %v3711_v11 = vld [vmem:[%s4817_s0 + $0xe8] ss:$16 sps:$4 sm:$0xff]   ;;  %v1575_v15 = vpack.c.bf16 %v431_v3, %v359_v63  ;;  %v495_v20 = vrot.slane %v3707_v9, %v3990_v44  ;;  %v992_v52 = vrot.slane %v3751_v39, %v3990_v44 }
  0x48   :  { %v567_v22 = vrot.slane %v3711_v11, %v3990_v44  ;;  %v3719_v38 = vld [vmem:[%s4817_s0 + $0x128] ss:$16 sps:$4 sm:$0xff]   ;;  %v721_v16 = vcombine.low %v704_v59, %v718_v60 }
  0x49   :  { %3422 = vmatpush3.bf16.msra.mxu1 %v3692_v45  ;;  %v504_v28 = vcombine.high %v481_v19, %v495_v20  ;;  %v503_v34 = vcombine.low %v481_v19, %v495_v20  ;;  %v3723_v45 = vld [vmem:[%s4817_s0 + $0x168] ss:$16 sps:$4 sm:$0xff]  }
  0x4a   :  { %v576_v29 = vcombine.high %v553_v21, %v567_v22  ;;  %v575_v36 = vcombine.low %v553_v21, %v567_v22  ;;  %v711_v55 = vrot.slane %v3723_v45, %v3990_v44  ;;  %v3729_v63 = vld [vmem:[%s4817_s0 + $0x188] ss:$16 sps:$4 sm:$0xff]   ;;  %v3752_v45 = vld [vmem:[%s4817_s0 + $0x26c] ss:$16 sps:$4 sm:$0xff]  }
  0x4b   :  { %2227 = vmatmul.mubr.bf16.gmra.mrb[20].mxu0 %v1611_v43  ;;  %v1405_v43 = vcombine.low %v1388_v32, %v1402_v33  ;;  %v574_v32 = vrot.slane %v3716_v23, %v3990_v44  ;;  %v506_v33 = vcombine.high %v488_v26, %v502_v27  ;;  %v769_v10 = vrot.slane %v3729_v63, %v3990_v44  ;;  %v3762_v63 = vld [vmem:[%s4817_s0 + $0x2ac] ss:$16 sps:$4 sm:$0xff]  }
  0x4c   :  { %2324 = vmatmul.mubr.bf16.gmra.mrb[20].mxu1 %v1613_v46  ;;  %2234 = vmatprep.mubr.bf16.mxu0 %v1620_v8  ;;  %v1628_v46 = vpack.c.bf16 %v1404_v37, %v1332_v31  ;;  %v362_v8 = vcombine.high %v344_v62, %v358_v1  ;;  %v560_v31 = vrot.slane %v3715_v18, %v3990_v44  ;;  %v3717_v37 = vld [vmem:[%s4817_s0 + $0x108] ss:$16 sps:$4 sm:$0xff]  }
  0x4d   :  { %2331 = vmatprep.mubr.bf16.mxu1 %v1622_v13  ;;  %v1629_v49 = vpack.c.bf16 %v1405_v43, %v1333_v40  ;;  %v433_v13 = vcombine.low %v416_v2, %v430_v5  ;;  %v1584_v40 = vpack.c.bf16 %v576_v29, %v504_v28  ;;  %v1583_v54 = vpack.c.bf16 %v575_v36, %v503_v34  ;;  %v3743_v28 = vld [vmem:[%s4817_s0 + $0x228] ss:$16 sps:$4 sm:$0xff]  }
  0x4e   :  { %v578_v41 = vcombine.high %v560_v31, %v574_v32  ;;  %v577_v43 = vcombine.low %v560_v31, %v574_v32  ;;  %v720_v62 = vcombine.high %v697_v50, %v711_v55  ;;  %v855_v18 = vrot.slane %v3735_v6, %v3990_v44  ;;  %v3745_v29 = vld [vmem:[%s4817_s0 + $0x248] ss:$16 sps:$4 sm:$0xff]  }
  0x4f   :  { %v1577_v25 = vpack.c.bf16 %v433_v13, %v361_v7  ;;  %v3737_v7 = vld [vmem:[%s4817_s0 + $0x18c] ss:$16 sps:$4 sm:$0xff]   ;;  %v3747_v31 = vld [vmem:[%s4817_s0 + $0x268] ss:$16 sps:$4 sm:$0xff]  }
  0x50   :  { %v1586_v53 = vpack.c.bf16 %v578_v41, %v506_v33  ;;  %v1585_v61 = vpack.c.bf16 %v577_v43, %v505_v42  ;;  %v3739_v13 = vld [vmem:[%s4817_s0 + $0x1cc] ss:$16 sps:$4 sm:$0xff]   ;;  %v776_v20 = vrot.slane %v3737_v7, %v3990_v44  ;;  %v927_v41 = vrot.slane %v3743_v28, %v3990_v44 }
  0x51   :  { %v848_v23 = vrot.slane %v3739_v13, %v3990_v44  ;;  %v985_v42 = vrot.slane %v3745_v29, %v3990_v44  ;;  %v999_v43 = vrot.slane %v3747_v31, %v3990_v44 }
  0x53   :  { %2235 = vmatmul.mubr.bf16.gmra.mrb[24].mxu0 %v1619_v12  ;;  %v1576_v12 = vpack.c.bf16 %v432_v4, %v360_v0  ;;  %v3731_v0 = vld [vmem:[%s4817_s0 + $0x1a8] ss:$16 sps:$4 sm:$0xff]   ;;  %v719_v4 = vcombine.low %v697_v50, %v711_v55  ;;  %v1008_v51 = vcombine.high %v985_v42, %v999_v43 }
  0x54   :  { %2332 = vmatmul.mubr.bf16.gmra.mrb[24].mxu1 %v1621_v14  ;;  %2242 = vmatprep.mubr.bf16.mxu0 %v1628_v46  ;;  %v434_v14 = vcombine.high %v416_v2, %v430_v5  ;;  %v3725_v46 = vld [vmem:[%s4817_s0 + $0x10c] ss:$16 sps:$4 sm:$0xff]   ;;  %v722_v2 = vcombine.high %v704_v59, %v718_v60  ;;  %v3733_v5 = vld [vmem:[%s4817_s0 + $0x1c8] ss:$16 sps:$4 sm:$0xff]   ;;  %v783_v11 = vrot.slane %v3731_v0, %v3990_v44 }
  0x55   :  { %2339 = vmatprep.mubr.bf16.mxu1 %v1630_v48  ;;  %v625_v48 = vrot.slane %v3717_v37, %v3990_v44  ;;  %v632_v56 = vrot.slane %v3725_v46, %v3990_v44  ;;  %v841_v17 = vrot.slane %v3733_v5, %v3990_v44  ;;  %v3749_v37 = vld [vmem:[%s4817_s0 + $0x20c] ss:$16 sps:$4 sm:$0xff]   ;;  %v3755_v55 = vld [vmem:[%s4817_s0 + $0x2a8] ss:$16 sps:$4 sm:$0xff]  }
  0x56   :  { %v1578_v24 = vpack.c.bf16 %v434_v14, %v362_v8  ;;  %v3740_v14 = vld [vmem:[%s4817_s0 + $0x1ec] ss:$16 sps:$4 sm:$0xff]   ;;  %v792_v19 = vcombine.high %v769_v10, %v783_v11  ;;  %v4514_v5 = vrot.slane %v3755_v55, %v3990_v44 }
  0x57   :  { %v864_v22 = vcombine.high %v841_v17, %v855_v18  ;;  %v3763_v0 = vld [vmem:[%s4817_s0 + $0x2cc] ss:$16 sps:$4 sm:$0xff]  }
  0x59   :  { %v1600_v33 = vpack.c.bf16 %v864_v22, %v792_v19  ;;  %v3771_v19 = vld [vmem:[%s4817_s0 + $0x368] ss:$16 sps:$4 sm:$0xff]   ;;  %v3775_v22 = vld [vmem:[%s4817_s0 + $0x34c] ss:$16 sps:$4 sm:$0xff]  }
  0x5b   :  { %2243 = vmatmul.mubr.bf16.gmra.mrb[28].mxu0 %v1627_v47  ;;  %v3726_v47 = vld [vmem:[%s4817_s0 + $0x12c] ss:$16 sps:$4 sm:$0xff]  }
  0x5c   :  { %2340 = vmatmul.mubr.bf16.gmra.mrb[28].mxu1 %v1629_v49  ;;  %2380 = vmatprep.mubr.bf16.mxu0 %v1576_v12  ;;  %v639_v49 = vrot.slane %v3719_v38, %v3990_v44  ;;  %v646_v58 = vrot.slane %v3726_v47, %v3990_v44  ;;  %v3738_v12 = vld [vmem:[%s4817_s0 + $0x1ac] ss:$16 sps:$4 sm:$0xff]   ;;  %v863_v47 = vcombine.low %v841_v17, %v855_v18  ;;  %v3767_v17 = vld [vmem:[%s4817_s0 + $0x328] ss:$16 sps:$4 sm:$0xff]  }
  0x5d   :  { %2477 = vmatprep.mubr.bf16.mxu1 %v1578_v24  ;;  %v790_v21 = vrot.slane %v3738_v12, %v3990_v44  ;;  %v862_v24 = vrot.slane %v3740_v14, %v3990_v44  ;;  %v3750_v38 = vld [vmem:[%s4817_s0 + $0x22c] ss:$16 sps:$4 sm:$0xff]   ;;  %v3765_v12 = vld [vmem:[%s4817_s0 + $0x308] ss:$16 sps:$4 sm:$0xff]   ;;  %v1078_v14 = vrot.slane %v3762_v63, %v3990_v44 }
  0x5e   :  { %v648_v57 = vcombine.high %v625_v48, %v639_v49  ;;  %v650_v1 = vcombine.high %v632_v56, %v646_v58  ;;  %v647_v3 = vcombine.low %v625_v48, %v639_v49  ;;  %v649_v9 = vcombine.low %v632_v56, %v646_v58  ;;  %v3757_v56 = vld [vmem:[%s4817_s0 + $0x2c8] ss:$16 sps:$4 sm:$0xff]  }
  0x5f   :  { %v794_v27 = vcombine.high %v776_v20, %v790_v21  ;;  %v866_v34 = vcombine.high %v848_v23, %v862_v24  ;;  %v920_v48 = vrot.slane %v3749_v37, %v3990_v44  ;;  %v934_v49 = vrot.slane %v3750_v38, %v3990_v44  ;;  %v3769_v18 = vld [vmem:[%s4817_s0 + $0x348] ss:$16 sps:$4 sm:$0xff]  }
  0x60   :  { %v1592_v8 = vpack.c.bf16 %v720_v62, %v648_v57  ;;  %v1591_v26 = vpack.c.bf16 %v719_v4, %v647_v3  ;;  %v1593_v32 = vpack.c.bf16 %v721_v16, %v649_v9  ;;  %v793_v57 = vcombine.low %v776_v20, %v790_v21  ;;  %v3761_v62 = vld [vmem:[%s4817_s0 + $0x28c] ss:$16 sps:$4 sm:$0xff]  }
  0x61   :  { %v1602_v46 = vpack.c.bf16 %v866_v34, %v794_v27  ;;  %v865_v58 = vcombine.low %v848_v23, %v862_v24  ;;  %v938_v59 = vcombine.high %v920_v48, %v934_v49  ;;  %v1129_v6 = vrot.slane %v3757_v56, %v3990_v44  ;;  %v3773_v20 = vld [vmem:[%s4817_s0 + $0x30c] ss:$16 sps:$4 sm:$0xff]  }
  0x62   :  { %v1064_v13 = vrot.slane %v3761_v62, %v3990_v44  ;;  %v3774_v21 = vld [vmem:[%s4817_s0 + $0x32c] ss:$16 sps:$4 sm:$0xff]   ;;  %v937_v24 = vcombine.low %v920_v48, %v934_v49  ;;  %v1273_v34 = vrot.slane %v3769_v18, %v3990_v44  ;;  %v1208_v39 = vrot.slane %v3773_v20, %v3990_v44 }
  0x63   :  { %2381 = vmatmul.mubr.bf16.vlgmr.msra.gmra.mrb[32].mxu0 %v1575_v15  ;;  %v1594_v15 = vpack.c.bf16 %v722_v2, %v650_v1  ;;  %v3764_v1 = vld [vmem:[%s4817_s0 + $0x2ec] ss:$16 sps:$4 sm:$0xff]  }
  0x64   :  { %2478 = vmatmul.mubr.bf16.vlgmr.msra.gmra.mrb[32].mxu1 %v1577_v25  ;;  %2388 = vmatprep.mubr.bf16.mxu0 %v1584_v40  ;;  %v3741_v25 = vld [vmem:[%s4817_s0 + $0x208] ss:$16 sps:$4 sm:$0xff]   ;;  %v791_v40 = vcombine.low %v769_v10, %v783_v11  ;;  %v1007_v11 = vcombine.low %v985_v42, %v999_v43  ;;  %v1150_v16 = vrot.slane %v3764_v1, %v3990_v44  ;;  %v3776_v23 = vld [vmem:[%s4817_s0 + $0x36c] ss:$16 sps:$4 sm:$0xff]  }
  0x65   :  { %2485 = vmatprep.mubr.bf16.mxu1 %v1586_v53  ;;  %v4464_v36 = vrot.slane %v3741_v25, %v3990_v44  ;;  %v1006_v53 = vrot.slane %v3752_v45, %v3990_v44  ;;  %v1082_v29 = vcombine.high %v1064_v13, %v1078_v14  ;;  %v1294_v42 = vrot.slane %v3776_v23, %v3990_v44  ;;  %v3777_v45 = vld [vmem:[%s4817_s0 + $0x388] ss:$16 sps:$4 sm:$0xff]  }
  0x66   :  { %v1599_v2 = vpack.c.bf16 %v863_v47, %v791_v40  ;;  %v1222_v40 = vrot.slane %v3774_v21, %v3990_v44  ;;  %v3781_v47 = vld [vmem:[%s4817_s0 + $0x3c8] ss:$16 sps:$4 sm:$0xff]  }
  0x67   :  { %v936_v50 = vcombine.high %v4464_v36, %v927_v41  ;;  %v1010_v60 = vcombine.high %v992_v52, %v1006_v53  ;;  %v935_v10 = vcombine.low %v4464_v36, %v927_v41  ;;  %v1009_v25 = vcombine.low %v992_v52, %v1006_v53  ;;  %v3783_v52 = vld [vmem:[%s4817_s0 + $0x3e8] ss:$16 sps:$4 sm:$0xff]  }
  0x68   :  { %v1287_v36 = vrot.slane %v3771_v19, %v3990_v44  ;;  %v1280_v41 = vrot.slane %v3775_v22, %v3990_v44 }
  0x69   :  { %v1608_v3 = vpack.c.bf16 %v1008_v51, %v936_v50  ;;  %v1610_v9 = vpack.c.bf16 %v1010_v60, %v938_v59  ;;  %v1607_v28 = vpack.c.bf16 %v1007_v11, %v935_v10  ;;  %v1609_v37 = vpack.c.bf16 %v1009_v25, %v937_v24 }
  0x6a   :  { %v1296_v51 = vcombine.high %v1273_v34, %v1287_v36 }
  0x6b   :  { %2389 = vmatmul.mubr.bf16.gmra.mrb[36].mxu0 %v1583_v54  ;;  %v3753_v54 = vld [vmem:[%s4817_s0 + $0x288] ss:$16 sps:$4 sm:$0xff]  }
  0x6c   :  { %2486 = vmatmul.mubr.bf16.gmra.mrb[36].mxu1 %v1585_v61  ;;  %2396 = vmatprep.mubr.bf16.mxu0 %v1592_v8  ;;  %v3759_v61 = vld [vmem:[%s4817_s0 + $0x2e8] ss:$16 sps:$4 sm:$0xff]   ;;  %v4511_v4 = vrot.slane %v3753_v54, %v3990_v44  ;;  %v1601_v8 = vpack.c.bf16 %v865_v58, %v793_v57 }
  0x6d   :  { %2493 = vmatprep.mubr.bf16.mxu1 %v1594_v15  ;;  %v1143_v7 = vrot.slane %v3759_v61, %v3990_v44  ;;  %v1136_v15 = vrot.slane %v3763_v0, %v3990_v44 }
  0x6e   :  { %v1079_v48 = vcombine.low %v4511_v4, %v4514_v5 }
  0x6f   :  { %v1152_v27 = vcombine.high %v1129_v6, %v1143_v7  ;;  %v1154_v31 = vcombine.high %v1136_v15, %v1150_v16  ;;  %v1151_v49 = vcombine.low %v1129_v6, %v1143_v7 }
  0x71   :  { %v1618_v43 = vpack.c.bf16 %v1154_v31, %v1082_v29 }
  0x73   :  { %2397 = vmatmul.mubr.bf16.gmra.mrb[40].mxu0 %v1591_v26  ;;  %v1080_v26 = vcombine.high %v4511_v4, %v4514_v5 }
  0x74   :  { %2404 = vmatprep.mubr.bf16.mxu0 %v1600_v33  ;;  %2494 = vmatmul.mubr.bf16.gmra.mrb[40].mxu1 %v1593_v32  ;;  %v1201_v32 = vrot.slane %v3765_v12, %v3990_v44  ;;  %v1215_v33 = vrot.slane %v3767_v17, %v3990_v44 }
  0x75   :  { %2501 = vmatprep.mubr.bf16.mxu1 %v1602_v46  ;;  %v1616_v38 = vpack.c.bf16 %v1152_v27, %v1080_v26  ;;  %v3779_v46 = vld [vmem:[%s4817_s0 + $0x3a8] ss:$16 sps:$4 sm:$0xff]  }
  0x76   :  { %v1224_v50 = vcombine.high %v1201_v32, %v1215_v33 }
  0x7b   :  { %2405 = vmatmul.mubr.bf16.gmra.mrb[44].mxu0 %v1599_v2 }
  0x7c   :  { %2412 = vmatprep.mubr.bf16.mxu0 %v1608_v3  ;;  %2502 = vmatmul.mubr.bf16.gmra.mrb[44].mxu1 %v1601_v8 }
  0x7d   :  { %2509 = vmatprep.mubr.bf16.mxu1 %v1610_v9 }
  0x83   :  { %2413 = vmatmul.mubr.bf16.gmra.mrb[48].mxu0 %v1607_v28 }
  0x84   :  { %2420 = vmatprep.mubr.bf16.mxu0 %v1616_v38 }
  0x85   :  { %15 = vsyncpa [#allocation4], 0  ;;  %2510 = vmatmul.mubr.bf16.gmra.mrb[48].mxu1 %v1609_v37  ;;  %v1081_v53 = vcombine.low %v1064_v13, %v1078_v14  ;;  %v1153_v54 = vcombine.low %v1136_v15, %v1150_v16  ;;  %v1226_v55 = vcombine.high %v1208_v39, %v1222_v40  ;;  %v1298_v56 = vcombine.high %v1280_v41, %v1294_v42  ;;  %v3785_v57 = vld [vmem:[%s4817_s0 + $0x38c] ss:$16 sps:$4 sm:$0xff]   ;;  %v3789_v26 = vld [vmem:[%s4820_s3] sm:$0xff]  }
  0x86   :  { %2517 = vmatprep.mubr.bf16.mxu1 %v1618_v43  ;;  %v3786_v58 = vld [vmem:[%s4817_s0 + $0x3ac] ss:$16 sps:$4 sm:$0xff]   ;;  %v1615_v61 = vpack.c.bf16 %v1151_v49, %v1079_v48  ;;  %v1624_v62 = vpack.c.bf16 %v1296_v51, %v1224_v50  ;;  %v1345_v63 = vrot.slane %v3777_v45, %v3990_v44  ;;  %v1359_v0 = vrot.slane %v3779_v46, %v3990_v44  ;;  %v4600_v31 = vld [vmem:[%s4819_s2] ss:$0 sm:$0xff] }
  0x87   :  { %v3787_v59 = vld [vmem:[%s4817_s0 + $0x3cc] ss:$16 sps:$4 sm:$0xff]   ;;  %v1417_v1 = vrot.slane %v3781_v47, %v3990_v44  ;;  %v1431_v2 = vrot.slane %v3783_v52, %v3990_v44  ;;  %v1617_v3 = vpack.c.bf16 %v1153_v54, %v1081_v53  ;;  %v1626_v4 = vpack.c.bf16 %v1298_v56, %v1226_v55  ;;  %3491 = vmatprep.subr.bf16.mxu0 %v3789_v26 }
  0x88   :  { %v3788_v60 = vld [vmem:[%s4817_s0 + $0x3ec] ss:$16 sps:$4 sm:$0xff]   ;;  %v1352_v5 = vrot.slane %v3785_v57, %v3990_v44  ;;  %v1366_v6 = vrot.slane %v3786_v58, %v3990_v44  ;;  %v1424_v7 = vrot.slane %v3787_v59, %v3990_v44  ;;  %v1223_v9 = vcombine.low %v1201_v32, %v1215_v33  ;;  %3492 = vmatpush3.bf16.msra.mxu0 %v3789_v26 }
  0x89   :  { %v1438_v8 = vrot.slane %v3788_v60, %v3990_v44  ;;  %v1295_v10 = vcombine.low %v1273_v34, %v1287_v36  ;;  %v1368_v11 = vcombine.high %v1345_v63, %v1359_v0  ;;  %v1440_v12 = vcombine.high %v1417_v1, %v1431_v2  ;;  %v3790_v27 = vld [vmem:[%s4820_s3 + $0x8] sm:$0xff]  }
  0x8a   :  { %v1225_v13 = vcombine.low %v1208_v39, %v1222_v40  ;;  %v1297_v14 = vcombine.low %v1280_v41, %v1294_v42  ;;  %v1370_v15 = vcombine.high %v1352_v5, %v1366_v6  ;;  %v1367_v21 = vcombine.low %v1345_v63, %v1359_v0  ;;  %3493 = vmatprep.subr.bf16.mxu0 %v3790_v27  ;;  %v3791_v63 = vld [vmem:[%s4822_s5] sm:$0xff]  }
  0x8b   :  { %2421 = vmatmul.mubr.bf16.gmra.mrb[52].mxu0 %v1615_v61  ;;  %v1442_v16 = vcombine.high %v1424_v7, %v1438_v8  ;;  %v1623_v17 = vpack.c.bf16 %v1295_v10, %v1223_v9  ;;  %v1632_v18 = vpack.c.bf16 %v1440_v12, %v1368_v11  ;;  %v1439_v22 = vcombine.low %v1417_v1, %v1431_v2 }
  0x8c   :  { %2428 = vmatprep.mubr.bf16.mxu0 %v1624_v62  ;;  %v1625_v19 = vpack.c.bf16 %v1297_v14, %v1225_v13  ;;  %v1369_v44 = vcombine.low %v1352_v5, %v1366_v6  ;;  %v1441_v23 = vcombine.low %v1424_v7, %v1438_v8  ;;  %3494 = vmatpush3.bf16.msra.mxu0 %v3790_v27  ;;  %vm2589_vm0 = vcmask 261120  }
  0x8d   :  { %2518 = vmatmul.mubr.bf16.gmra.mrb[52].mxu1 %v1617_v3  ;;  %v1634_v20 = vpack.c.bf16 %v1442_v16, %v1370_v15  ;;  %v1631_v24 = vpack.c.bf16 %v1439_v22, %v1367_v21  ;;  %3511 = vmatprep.subr.bf16.mxu1 %v3791_v63  ;;  %vm3011_vm1 = vcmask 130112   ;;  %vm3018_vm2 = vcmask 195712  }
  0x8e   :  { %2525 = vmatprep.mubr.bf16.mxu1 %v1626_v4  ;;  %v1633_v25 = vpack.c.bf16 %v1441_v23, %v1369_v44  ;;  %3512 = vmatpush3.bf16.msra.mxu1 %v3791_v63  ;;  %vm3025_vm3 = vcmask 261312   ;;  %vm3032_vm4 = vcmask 326912   ;;  %vm3039_vm5 = vcmask 392512  }
  0x8f   :  { %vm3046_vm6 = vcmask 458112   ;;  %vm3053_vm7 = vcmask 523712   ;;  %vm3060_vm8 = vcmask 589312   ;;  %vm3067_vm9 = vcmask 654912  }
  0x90   :  { %vm3074_vm10 = vcmask 720512   ;;  %vm3081_vm11 = vcmask 786112   ;;  %vm3088_vm12 = vcmask 851712   ;;  %vm3095_vm13 = vcmask 917312  }
  0x91   :  { %vm3102_vm14 = vcmask 982912   ;;  %vm3109_vm15 = vcmask 1048512  }
  0x93   :  { %2429 = vmatmul.mubr.bf16.gmra.mrb[56].mxu0 %v1623_v17 }
  0x94   :  { %2436 = vmatprep.mubr.bf16.mxu0 %v1632_v18 }
  0x95   :  { %2526 = vmatmul.mubr.bf16.gmra.mrb[56].mxu1 %v1625_v19 }
  0x96   :  { %2533 = vmatprep.mubr.bf16.mxu1 %v1634_v20 }
  0x9b   :  { %2437 = vmatmul.mubr.bf16.gmra.mrb[60].mxu0 %v1631_v24 }
  0x9d   :  { %2534 = vmatmul.mubr.bf16.gmra.mrb[60].mxu1 %v1633_v25 }
  0xf6   :  { %v3231_v28 = vpop.f32.mrb[0].mxu0 }
  0xf7   :  { %v3295_v29 = vpop.f32.mrb[0].mxu1  ;;  %v3232_v32 = vpop.f32.mrb[1].mxu0 }
  0xf8   :  { %v3233_v33 = vadd.f32 %v3232_v32, %v3231_v28  ;;  %v3296_v34 = vpop.f32.mrb[1].mxu1  ;;  %v3234_v36 = vpop.f32.mrb[2].mxu0 }
  0xf9   :  { %v3297_v37 = vadd.f32 %v3296_v34, %v3295_v29  ;;  %v3298_v38 = vpop.f32.mrb[2].mxu1  ;;  %v3235_v39 = vpop.f32.mrb[3].mxu0 }
  0xfa   :  { %v2189_v40 = vadd.f32 %v3233_v33, %v4600_v31  ;;  %v3236_v41 = vadd.f32 %v3235_v39, %v3234_v36  ;;  %v3299_v42 = vpop.f32.mrb[3].mxu1 }
  0xfb   :  { %v3300_v43 = vadd.f32 %v3299_v42, %v3298_v38 }
  0xfc   :  { %v4603_v45 = vadd.f32 %v3297_v37, %v2189_v40  ;;  %v2192_v46 = vadd.f32 %v3236_v41, %v4600_v31 }
  0xfe   :  { %v4606_v47 = vadd.f32 %v3300_v43, %v2192_v46  ;;  %v3237_v48 = vpop.f32.mrb[4].mxu0 }
  0xff   :  { %v3301_v49 = vpop.f32.mrb[4].mxu1  ;;  %v3238_v50 = vpop.f32.mrb[5].mxu0 }
 0x100   :  { %v3239_v51 = vadd.f32 %v3238_v50, %v3237_v48  ;;  %v3302_v52 = vpop.f32.mrb[5].mxu1  ;;  %v3240_v53 = vpop.f32.mrb[6].mxu0 }
 0x101   :  { %v3303_v54 = vadd.f32 %v3302_v52, %v3301_v49  ;;  %v3304_v55 = vpop.f32.mrb[6].mxu1  ;;  %v3241_v56 = vpop.f32.mrb[7].mxu0 }
 0x102   :  { %v2197_v57 = vadd.f32 %v3239_v51, %v4600_v31  ;;  %v3242_v58 = vadd.f32 %v3241_v56, %v3240_v53  ;;  %v3305_v59 = vpop.f32.mrb[7].mxu1 }
 0x103   :  { %v3306_v60 = vadd.f32 %v3305_v59, %v3304_v55 }
 0x104   :  { %v4609_v61 = vadd.f32 %v3303_v54, %v2197_v57  ;;  %v2200_v62 = vadd.f32 %v3242_v58, %v4600_v31 }
 0x106   :  { %v4615_v0 = vadd.f32 %v3306_v60, %v2200_v62  ;;  %v3243_v1 = vpop.f32.mrb[8].mxu0 }
 0x107   :  { %v3307_v2 = vpop.f32.mrb[8].mxu1  ;;  %v3244_v3 = vpop.f32.mrb[9].mxu0 }
 0x108   :  { %v3245_v4 = vadd.f32 %v3244_v3, %v3243_v1  ;;  %v3308_v5 = vpop.f32.mrb[9].mxu1  ;;  %v3246_v6 = vpop.f32.mrb[10].mxu0 }
 0x109   :  { %v3309_v7 = vadd.f32 %v3308_v5, %v3307_v2  ;;  %v3310_v8 = vpop.f32.mrb[10].mxu1  ;;  %v3247_v9 = vpop.f32.mrb[11].mxu0 }
 0x10a   :  { %v2205_v10 = vadd.f32 %v3245_v4, %v4600_v31  ;;  %v3248_v11 = vadd.f32 %v3247_v9, %v3246_v6  ;;  %v3311_v12 = vpop.f32.mrb[11].mxu1 }
 0x10b   :  { %v3312_v13 = vadd.f32 %v3311_v12, %v3310_v8 }
 0x10c   :  { %v4618_v14 = vadd.f32 %v3309_v7, %v2205_v10  ;;  %v2208_v15 = vadd.f32 %v3248_v11, %v4600_v31 }
 0x10e   :  { %v4621_v16 = vadd.f32 %v3312_v13, %v2208_v15  ;;  %v3249_v17 = vpop.f32.mrb[12].mxu0 }
 0x10f   :  { %v3250_v18 = vpop.f32.mrb[13].mxu0  ;;  %v3313_v19 = vpop.f32.mrb[12].mxu1 }
 0x110   :  { %v3251_v20 = vadd.f32 %v3250_v18, %v3249_v17  ;;  %v3252_v21 = vpop.f32.mrb[14].mxu0  ;;  %v3314_v22 = vpop.f32.mrb[13].mxu1 }
 0x111   :  { %v3253_v44 = vpop.f32.mrb[15].mxu0  ;;  %v3315_v24 = vadd.f32 %v3314_v22, %v3313_v19  ;;  %v3316_v25 = vpop.f32.mrb[14].mxu1 }
 0x112   :  { %v2213_v23 = vadd.f32 %v3251_v20, %v4600_v31  ;;  %v3254_v26 = vadd.f32 %v3253_v44, %v3252_v21  ;;  %v3317_v27 = vpop.f32.mrb[15].mxu1 }
 0x113   :  { %v3318_v32 = vadd.f32 %v3317_v27, %v3316_v25 }
 0x114   :  { %v4624_v28 = vadd.f32 %v3315_v24, %v2213_v23  ;;  %v2216_v29 = vadd.f32 %v3254_v26, %v4600_v31 }
 0x116   :  { %v4627_v33 = vadd.f32 %v3318_v32, %v2216_v29  ;;  %v3255_v34 = vpop.f32.mrb[16].mxu0 }
 0x117   :  { %v3319_v36 = vpop.f32.mrb[16].mxu1  ;;  %v3256_v37 = vpop.f32.mrb[17].mxu0 }
 0x118   :  { %v3257_v38 = vadd.f32 %v3256_v37, %v3255_v34  ;;  %v3320_v39 = vpop.f32.mrb[17].mxu1  ;;  %v3258_v40 = vpop.f32.mrb[18].mxu0 }
 0x119   :  { %v3321_v41 = vadd.f32 %v3320_v39, %v3319_v36  ;;  %v3322_v42 = vpop.f32.mrb[18].mxu1  ;;  %v3259_v43 = vpop.f32.mrb[19].mxu0 }
 0x11a   :  { %v2221_v46 = vadd.f32 %v3257_v38, %v4600_v31  ;;  %v3260_v48 = vadd.f32 %v3259_v43, %v3258_v40  ;;  %v3323_v49 = vpop.f32.mrb[19].mxu1 }
 0x11b   :  { %v3324_v50 = vadd.f32 %v3323_v49, %v3322_v42 }
 0x11c   :  { %v4630_v51 = vadd.f32 %v3321_v41, %v2221_v46  ;;  %v2224_v52 = vadd.f32 %v3260_v48, %v4600_v31 }
 0x11e   :  { %v4633_v53 = vadd.f32 %v3324_v50, %v2224_v52  ;;  %v3261_v54 = vpop.f32.mrb[20].mxu0 }
 0x11f   :  { %v3325_v55 = vpop.f32.mrb[20].mxu1  ;;  %v3262_v56 = vpop.f32.mrb[21].mxu0 }
 0x120   :  { %v3263_v57 = vadd.f32 %v3262_v56, %v3261_v54  ;;  %v3326_v58 = vpop.f32.mrb[21].mxu1  ;;  %v3264_v59 = vpop.f32.mrb[22].mxu0 }
 0x121   :  { %v3327_v60 = vadd.f32 %v3326_v58, %v3325_v55  ;;  %v3328_v62 = vpop.f32.mrb[22].mxu1  ;;  %v3265_v63 = vpop.f32.mrb[23].mxu0 }
 0x122   :  { %v2229_v1 = vadd.f32 %v3263_v57, %v4600_v31  ;;  %v3266_v2 = vadd.f32 %v3265_v63, %v3264_v59  ;;  %v3329_v3 = vpop.f32.mrb[23].mxu1 }
 0x123   :  { %v3330_v4 = vadd.f32 %v3329_v3, %v3328_v62 }
 0x124   :  { %v4636_v5 = vadd.f32 %v3327_v60, %v2229_v1  ;;  %v2232_v6 = vadd.f32 %v3266_v2, %v4600_v31 }
 0x126   :  { %v4639_v7 = vadd.f32 %v3330_v4, %v2232_v6  ;;  %v3267_v8 = vpop.f32.mrb[24].mxu0 }
 0x127   :  { %v3268_v9 = vpop.f32.mrb[25].mxu0  ;;  %v3331_v10 = vpop.f32.mrb[24].mxu1 }
 0x128   :  { %v3269_v11 = vadd.f32 %v3268_v9, %v3267_v8  ;;  %v3270_v12 = vpop.f32.mrb[26].mxu0  ;;  %v3332_v13 = vpop.f32.mrb[25].mxu1 }
 0x129   :  { %v3271_v15 = vpop.f32.mrb[27].mxu0  ;;  %v3333_v18 = vadd.f32 %v3332_v13, %v3331_v10  ;;  %v3334_v19 = vpop.f32.mrb[26].mxu1 }
 0x12a   :  { %v2237_v17 = vadd.f32 %v3269_v11, %v4600_v31  ;;  %v3272_v20 = vadd.f32 %v3271_v15, %v3270_v12  ;;  %v3335_v21 = vpop.f32.mrb[27].mxu1 }
 0x12b   :  { %v3336_v23 = vadd.f32 %v3335_v21, %v3334_v19 }
 0x12c   :  { %v4642_v22 = vadd.f32 %v3333_v18, %v2237_v17  ;;  %v2240_v44 = vadd.f32 %v3272_v20, %v4600_v31 }
 0x12e   :  { %v4645_v24 = vadd.f32 %v3336_v23, %v2240_v44  ;;  %v3273_v25 = vpop.f32.mrb[28].mxu0 }
 0x12f   :  { %v3337_v26 = vpop.f32.mrb[28].mxu1  ;;  %v3274_v27 = vpop.f32.mrb[29].mxu0 }
 0x130   :  { %v3275_v29 = vadd.f32 %v3274_v27, %v3273_v25  ;;  %v3338_v32 = vpop.f32.mrb[29].mxu1  ;;  %v3276_v34 = vpop.f32.mrb[30].mxu0 }
 0x131   :  { %v3339_v36 = vadd.f32 %v3338_v32, %v3337_v26  ;;  %v3340_v37 = vpop.f32.mrb[30].mxu1  ;;  %v3277_v38 = vpop.f32.mrb[31].mxu0 }
 0x132   :  { %v2245_v39 = vadd.f32 %v3275_v29, %v4600_v31  ;;  %v3278_v40 = vadd.f32 %v3277_v38, %v3276_v34  ;;  %v3341_v41 = vpop.f32.mrb[31].mxu1 }
 0x133   :  { %v3342_v42 = vadd.f32 %v3341_v41, %v3340_v37 }
 0x134   :  { %v4648_v43 = vadd.f32 %v3339_v36, %v2245_v39  ;;  %v2248_v46 = vadd.f32 %v3278_v40, %v4600_v31 }
 0x136   :  { %v4651_v48 = vadd.f32 %v3342_v42, %v2248_v46  ;;  %v3359_v49 = vpop.f32.mrb[32].mxu0 }
 0x137   :  { %v3360_v50 = vpop.f32.mrb[33].mxu0  ;;  %v3423_v52 = vpop.f32.mrb[32].mxu1 }
 0x138   :  { %v3361_v54 = vadd.f32 %v3360_v50, %v3359_v49  ;;  %v3362_v55 = vpop.f32.mrb[34].mxu0  ;;  %v3424_v56 = vpop.f32.mrb[33].mxu1 }
 0x139   :  { %v3363_v57 = vpop.f32.mrb[35].mxu0  ;;  %v3425_v59 = vadd.f32 %v3424_v56, %v3423_v52  ;;  %v3426_v60 = vpop.f32.mrb[34].mxu1 }
 0x13a   :  { %v2383_v58 = vadd.f32 %v3361_v54, %v4603_v45  ;;  %v3364_v62 = vadd.f32 %v3363_v57, %v3362_v55  ;;  %v3427_v63 = vpop.f32.mrb[35].mxu1 }
 0x13b   :  { %v3428_v3 = vadd.f32 %v3427_v63, %v3426_v60 }
 0x13c   :  { %v2480_v1 = vadd.f32 %v3425_v59, %v2383_v58  ;;  %v2386_v2 = vadd.f32 %v3364_v62, %v4606_v47 }
 0x13e   :  { %v2483_v31 = vadd.f32 %v3428_v3, %v2386_v2  ;;  %v3365_v4 = vpop.f32.mrb[36].mxu0  ;;  %v2542_v8 = vmax.f32 %v2480_v1, 0.0 }
 0x13f   :  { %v3366_v6 = vpop.f32.mrb[37].mxu0  ;;  %v3429_v10 = vpop.f32.mrb[36].mxu1 }
 0x140   :  { %v2543_v9 = vmax.f32 %v2483_v31, 0.0  ;;  %v3367_v11 = vadd.f32 %v3366_v6, %v3365_v4  ;;  %v3368_v12 = vpop.f32.mrb[38].mxu0  ;;  %v3430_v13 = vpop.f32.mrb[37].mxu1 }
 0x141   :  { %v3369_v15 = vpop.f32.mrb[39].mxu0  ;;  %v3431_v18 = vadd.f32 %v3430_v13, %v3429_v10  ;;  %v3432_v19 = vpop.f32.mrb[38].mxu1 }
 0x142   :  { %v2558_v45 = vpack.c.bf16 %v2543_v9, %v2542_v8  ;;  %v2391_v17 = vadd.f32 %v3367_v11, %v4609_v61  ;;  %v3370_v20 = vadd.f32 %v3369_v15, %v3368_v12  ;;  %v3433_v21 = vpop.f32.mrb[39].mxu1 }
 0x143   :  { %v3434_v23 = vadd.f32 %v3433_v21, %v3432_v19 }
 0x144   :  { %v2488_v47 = vadd.f32 %v3431_v18, %v2391_v17  ;;  %v2394_v44 = vadd.f32 %v3370_v20, %v4615_v0  ;;  %3495 = vmatprep.mubr.msk.bf16.mxu0 %vm2589_vm0, %v2558_v45 }
 0x146   :  { %v2491_v25 = vadd.f32 %v3434_v23, %v2394_v44  ;;  %v3371_v26 = vpop.f32.mrb[40].mxu0  ;;  %v2544_v29 = vmax.f32 %v2488_v47, 0.0 }
 0x147   :  { %v3372_v27 = vpop.f32.mrb[41].mxu0  ;;  %v3435_v34 = vpop.f32.mrb[40].mxu1 }
 0x148   :  { %v2545_v32 = vmax.f32 %v2491_v25, 0.0  ;;  %v3373_v36 = vadd.f32 %v3372_v27, %v3371_v26  ;;  %v3374_v37 = vpop.f32.mrb[42].mxu0  ;;  %v3436_v38 = vpop.f32.mrb[41].mxu1 }
 0x149   :  { %v3375_v61 = vpop.f32.mrb[43].mxu0  ;;  %v3437_v41 = vadd.f32 %v3436_v38, %v3435_v34  ;;  %v3438_v42 = vpop.f32.mrb[42].mxu1 }
 0x14a   :  { %v2559_v39 = vpack.c.bf16 %v2545_v32, %v2544_v29  ;;  %v2399_v40 = vadd.f32 %v3373_v36, %v4618_v14  ;;  %v3376_v46 = vadd.f32 %v3375_v61, %v3374_v37  ;;  %v3439_v0 = vpop.f32.mrb[43].mxu1 }
 0x14b   :  { %v3440_v52 = vadd.f32 %v3439_v0, %v3438_v42 }
 0x14c   :  { %v2496_v49 = vadd.f32 %v3437_v41, %v2399_v40  ;;  %v2402_v50 = vadd.f32 %v3376_v46, %v4621_v16  ;;  %3496 = vmatmul.mubr.msk.bf16.vlgmr.msra.gmra.mrb[64].mxu0 %vm2589_vm0, %v2559_v39 }
 0x14e   :  { %v2499_v54 = vadd.f32 %v3440_v52, %v2402_v50  ;;  %v3377_v55 = vpop.f32.mrb[44].mxu0  ;;  %v2546_v57 = vmax.f32 %v2496_v49, 0.0 }
 0x14f   :  { %v3378_v56 = vpop.f32.mrb[45].mxu0  ;;  %v3441_v59 = vpop.f32.mrb[44].mxu1 }
 0x150   :  { %v2547_v58 = vmax.f32 %v2499_v54, 0.0  ;;  %v3379_v60 = vadd.f32 %v3378_v56, %v3377_v55  ;;  %v3380_v62 = vpop.f32.mrb[46].mxu0  ;;  %v3442_v63 = vpop.f32.mrb[45].mxu1 }
 0x151   :  { %v3381_v14 = vpop.f32.mrb[47].mxu0  ;;  %v3443_v3 = vadd.f32 %v3442_v63, %v3441_v59  ;;  %v3444_v31 = vpop.f32.mrb[46].mxu1 }
 0x152   :  { %v2560_v1 = vpack.c.bf16 %v2547_v58, %v2546_v57  ;;  %v2407_v2 = vadd.f32 %v3379_v60, %v4624_v28  ;;  %v3382_v4 = vadd.f32 %v3381_v14, %v3380_v62  ;;  %v3445_v16 = vpop.f32.mrb[47].mxu1 }
 0x153   :  { %v3446_v9 = vadd.f32 %v3445_v16, %v3444_v31 }
 0x154   :  { %v2504_v6 = vadd.f32 %v3443_v3, %v2407_v2  ;;  %v2410_v8 = vadd.f32 %v3382_v4, %v4627_v33  ;;  %3499 = vmatprep.mubr.msk.bf16.mxu0 %vm2589_vm0, %v2560_v1 }
 0x156   :  { %v2507_v10 = vadd.f32 %v3446_v9, %v2410_v8  ;;  %v3383_v11 = vpop.f32.mrb[48].mxu0  ;;  %v2548_v13 = vmax.f32 %v2504_v6, 0.0 }
 0x157   :  { %v3384_v12 = vpop.f32.mrb[49].mxu0 }
 0x158   :  { %v2549_v15 = vmax.f32 %v2507_v10, 0.0  ;;  %v3447_v45 = vpop.f32.mrb[48].mxu1  ;;  %v3385_v17 = vadd.f32 %v3384_v12, %v3383_v11  ;;  %v3386_v18 = vpop.f32.mrb[50].mxu0 }
 0x159   :  { %v3448_v19 = vpop.f32.mrb[49].mxu1  ;;  %v3387_v28 = vpop.f32.mrb[51].mxu0 }
 0x15a   :  { %v2561_v20 = vpack.c.bf16 %v2549_v15, %v2548_v13  ;;  %v2415_v21 = vadd.f32 %v3385_v17, %v4630_v51  ;;  %v3449_v47 = vadd.f32 %v3448_v19, %v3447_v45  ;;  %v3450_v44 = vpop.f32.mrb[50].mxu1  ;;  %v3388_v23 = vadd.f32 %v3387_v28, %v3386_v18 }
 0x15b   :  { %v3451_v33 = vpop.f32.mrb[51].mxu1 }
 0x15c   :  { %v2512_v25 = vadd.f32 %v3449_v47, %v2415_v21  ;;  %v2418_v26 = vadd.f32 %v3388_v23, %v4633_v53  ;;  %v3452_v27 = vadd.f32 %v3451_v33, %v3450_v44  ;;  %3500 = vmatmul.mubr.msk.bf16.gmra.mrb[68].mxu0 %vm2589_vm0, %v2561_v20 }
 0x15e   :  { %v2515_v29 = vadd.f32 %v3452_v27, %v2418_v26  ;;  %v3389_v32 = vpop.f32.mrb[52].mxu0  ;;  %v2550_v36 = vmax.f32 %v2512_v25, 0.0 }
 0x15f   :  { %v3390_v34 = vpop.f32.mrb[53].mxu0 }
 0x160   :  { %v2551_v37 = vmax.f32 %v2515_v29, 0.0  ;;  %v3453_v38 = vpop.f32.mrb[52].mxu1  ;;  %v3391_v61 = vadd.f32 %v3390_v34, %v3389_v32  ;;  %v3392_v39 = vpop.f32.mrb[54].mxu0  ;;  %v3192_v32 = vld [vmem:[%s4821_s4] ss:$0 sm:$0xff] }
 0x161   :  { %v3454_v40 = vpop.f32.mrb[53].mxu1  ;;  %v3393_v51 = vpop.f32.mrb[55].mxu0 }
 0x162   :  { %v2562_v41 = vpack.c.bf16 %v2551_v37, %v2550_v36  ;;  %v2423_v42 = vadd.f32 %v3391_v61, %v4636_v5  ;;  %v3455_v46 = vadd.f32 %v3454_v40, %v3453_v38  ;;  %v3456_v0 = vpop.f32.mrb[54].mxu1  ;;  %v3394_v49 = vadd.f32 %v3393_v51, %v3392_v39 }
 0x163   :  { %v3457_v53 = vpop.f32.mrb[55].mxu1 }
 0x164   :  { %v2520_v50 = vadd.f32 %v3455_v46, %v2423_v42  ;;  %v2426_v52 = vadd.f32 %v3394_v49, %v4639_v7  ;;  %v3458_v54 = vadd.f32 %v3457_v53, %v3456_v0  ;;  %3503 = vmatprep.mubr.msk.bf16.mxu0 %vm2589_vm0, %v2562_v41 }
 0x166   :  { %v2523_v55 = vadd.f32 %v3458_v54, %v2426_v52  ;;  %v3395_v56 = vpop.f32.mrb[56].mxu0  ;;  %v2552_v58 = vmax.f32 %v2520_v50, 0.0 }
 0x167   :  { %v3396_v57 = vpop.f32.mrb[57].mxu0 }
 0x168   :  { %v2553_v59 = vmax.f32 %v2523_v55, 0.0  ;;  %v3459_v60 = vpop.f32.mrb[56].mxu1  ;;  %v3397_v62 = vadd.f32 %v3396_v57, %v3395_v56  ;;  %v3398_v63 = vpop.f32.mrb[58].mxu0 }
 0x169   :  { %v3460_v14 = vpop.f32.mrb[57].mxu1  ;;  %v3399_v5 = vpop.f32.mrb[59].mxu0 }
 0x16a   :  { %v2563_v1 = vpack.c.bf16 %v2553_v59, %v2552_v58  ;;  %v2431_v2 = vadd.f32 %v3397_v62, %v4642_v22  ;;  %v3461_v3 = vadd.f32 %v3460_v14, %v3459_v60  ;;  %v3462_v31 = vpop.f32.mrb[58].mxu1  ;;  %v3400_v4 = vadd.f32 %v3399_v5, %v3398_v63 }
 0x16b   :  { %v3463_v7 = vpop.f32.mrb[59].mxu1 }
 0x16c   :  { %v2528_v16 = vadd.f32 %v3461_v3, %v2431_v2  ;;  %v2434_v6 = vadd.f32 %v3400_v4, %v4645_v24  ;;  %v3464_v8 = vadd.f32 %v3463_v7, %v3462_v31  ;;  %3504 = vmatmul.mubr.msk.bf16.gmra.mrb[72].mxu0 %vm2589_vm0, %v2563_v1 }
 0x16e   :  { %v2531_v9 = vadd.f32 %v3464_v8, %v2434_v6  ;;  %v3401_v10 = vpop.f32.mrb[60].mxu0  ;;  %v2554_v12 = vmax.f32 %v2528_v16, 0.0 }
 0x16f   :  { %v3402_v11 = vpop.f32.mrb[61].mxu0 }
 0x170   :  { %v2555_v13 = vmax.f32 %v2531_v9, 0.0  ;;  %v3465_v15 = vpop.f32.mrb[60].mxu1  ;;  %v3403_v45 = vadd.f32 %v3402_v11, %v3401_v10  ;;  %v3404_v17 = vpop.f32.mrb[62].mxu0 }
 0x171   :  { %v3466_v18 = vpop.f32.mrb[61].mxu1  ;;  %v3405_v22 = vpop.f32.mrb[63].mxu0 }
 0x172   :  { %v2564_v19 = vpack.c.bf16 %v2555_v13, %v2554_v12  ;;  %v2439_v28 = vadd.f32 %v3403_v45, %v4648_v43  ;;  %v3467_v20 = vadd.f32 %v3466_v18, %v3465_v15  ;;  %v3468_v21 = vpop.f32.mrb[62].mxu1  ;;  %v3406_v47 = vadd.f32 %v3405_v22, %v3404_v17  ;;  %v3792_v43 = vld [vmem:[%s4822_s5 + $0x8] sm:$0xff]  }
 0x173   :  { %v3469_v24 = vpop.f32.mrb[63].mxu1  ;;  %3513 = vmatprep.subr.bf16.mxu1 %v3792_v43 }
 0x174   :  { %v2536_v44 = vadd.f32 %v3467_v20, %v2439_v28  ;;  %v2442_v23 = vadd.f32 %v3406_v47, %v4651_v48  ;;  %v3470_v33 = vadd.f32 %v3469_v24, %v3468_v21  ;;  %3507 = vmatprep.mubr.msk.bf16.mxu0 %vm2589_vm0, %v2564_v19  ;;  %3514 = vmatpush3.bf16.msra.mxu1 %v3792_v43 }
 0x176   :  { %v2539_v25 = vadd.f32 %v3470_v33, %v2442_v23  ;;  %v2556_v26 = vmax.f32 %v2536_v44, 0.0 }
 0x178   :  { %v2557_v27 = vmax.f32 %v2539_v25, 0.0  ;;  %v4694_v25 = vld [vmem:[%s4823_s6] ss:$0 sm:$0xff] }
 0x17a   :  { %v2565_v29 = vpack.c.bf16 %v2557_v27, %v2556_v26 }
 0x17c   :  { %3508 = vmatmul.mubr.msk.bf16.gmra.mrb[76].mxu0 %vm2589_vm0, %v2565_v29 }
 0x21f   :  { %v3497_v48 = vpop.f32.mrb[64].mxu0 }
 0x220   :  { %v2657_v34 = vadd.f32 %v3497_v48, %v3192_v32  ;;  %v2648_v36 = vpop.f32.mrb[65].mxu0  ;;  %v4701_v48 = vld [vmem:[%s4824_s7] ss:$0 sm:$0xff] }
 0x221   :  { %v2649_v37 = vadd.f32 %v3192_v32, %v2648_v36  ;;  %v3498_v38 = vpop.f32.mrb[66].mxu0 }
 0x222   :  { %v2660_v61 = vadd.f32 %v3498_v38, %v3192_v32  ;;  %v2651_v39 = vpop.f32.mrb[67].mxu0  ;;  %v2713_v51 = vmax.f32 %v2657_v34, 0.0 }
 0x223   :  { %v2652_v40 = vadd.f32 %v3192_v32, %v2651_v39  ;;  %v2711_v42 = vmax.f32 %v2649_v37, 0.0 }
 0x224   :  { %v2714_v41 = vmax.f32 %v2660_v61, 0.0 }
 0x225   :  { %v2712_v46 = vmax.f32 %v2652_v40, 0.0 }
 0x226   :  { %v2728_v0 = vpack.c.bf16 %v2714_v41, %v2713_v51 }
 0x227   :  { %v2727_v49 = vpack.c.bf16 %v2712_v46, %v2711_v42 }
 0x229   :  { %3515 = vmatprep.mubr.msk.bf16.mxu1 %vm2589_vm0, %v2727_v49 }
 0x22a   :  { %3516 = vmatmul.mubr.msk.bf16.vlgmr.msra.gmra.mrb[64].mxu1 %vm2589_vm0, %v2728_v0 }
 0x22f   :  { %v3501_v53 = vpop.f32.mrb[68].mxu0 }
 0x230   :  { %v2673_v50 = vadd.f32 %v3501_v53, %v3192_v32  ;;  %v2664_v52 = vpop.f32.mrb[69].mxu0 }
 0x231   :  { %v2665_v54 = vadd.f32 %v3192_v32, %v2664_v52  ;;  %v3502_v55 = vpop.f32.mrb[70].mxu0 }
 0x232   :  { %v2676_v56 = vadd.f32 %v3502_v55, %v3192_v32  ;;  %v2667_v57 = vpop.f32.mrb[71].mxu0  ;;  %v2717_v59 = vmax.f32 %v2673_v50, 0.0 }
 0x233   :  { %v2668_v58 = vadd.f32 %v3192_v32, %v2667_v57  ;;  %v2715_v62 = vmax.f32 %v2665_v54, 0.0 }
 0x234   :  { %v2718_v60 = vmax.f32 %v2676_v56, 0.0 }
 0x235   :  { %v2716_v63 = vmax.f32 %v2668_v58, 0.0 }
 0x236   :  { %v2730_v14 = vpack.c.bf16 %v2718_v60, %v2717_v59 }
 0x237   :  { %v2729_v5 = vpack.c.bf16 %v2716_v63, %v2715_v62 }
 0x239   :  { %3519 = vmatprep.mubr.msk.bf16.mxu1 %vm2589_vm0, %v2729_v5 }
 0x23a   :  { %3520 = vmatmul.mubr.msk.bf16.gmra.mrb[68].mxu1 %vm2589_vm0, %v2730_v14 }
 0x23f   :  { %v3505_v1 = vpop.f32.mrb[72].mxu0 }
 0x240   :  { %v2689_v2 = vadd.f32 %v3505_v1, %v3192_v32  ;;  %v2680_v3 = vpop.f32.mrb[73].mxu0 }
 0x241   :  { %v2681_v31 = vadd.f32 %v3192_v32, %v2680_v3  ;;  %v3506_v4 = vpop.f32.mrb[74].mxu0 }
 0x242   :  { %v2692_v7 = vadd.f32 %v3506_v4, %v3192_v32  ;;  %v2683_v16 = vpop.f32.mrb[75].mxu0  ;;  %v2721_v8 = vmax.f32 %v2689_v2, 0.0 }
 0x243   :  { %v2684_v6 = vadd.f32 %v3192_v32, %v2683_v16  ;;  %v2719_v10 = vmax.f32 %v2681_v31, 0.0 }
 0x244   :  { %v2722_v9 = vmax.f32 %v2692_v7, 0.0 }
 0x245   :  { %v2720_v11 = vmax.f32 %v2684_v6, 0.0 }
 0x246   :  { %v2732_v12 = vpack.c.bf16 %v2722_v9, %v2721_v8 }
 0x247   :  { %v2731_v13 = vpack.c.bf16 %v2720_v11, %v2719_v10 }
 0x249   :  { %3523 = vmatprep.mubr.msk.bf16.mxu1 %vm2589_vm0, %v2731_v13 }
 0x24a   :  { %3524 = vmatmul.mubr.msk.bf16.gmra.mrb[72].mxu1 %vm2589_vm0, %v2732_v12 }
 0x24f   :  { %v3509_v15 = vpop.f32.mrb[76].mxu0 }
 0x250   :  { %v2705_v45 = vadd.f32 %v3509_v15, %v3192_v32  ;;  %v2696_v17 = vpop.f32.mrb[77].mxu0 }
 0x251   :  { %v2697_v18 = vadd.f32 %v3192_v32, %v2696_v17  ;;  %v3510_v22 = vpop.f32.mrb[78].mxu0 }
 0x252   :  { %v2708_v19 = vadd.f32 %v3510_v22, %v3192_v32  ;;  %v2699_v28 = vpop.f32.mrb[79].mxu0  ;;  %v2725_v21 = vmax.f32 %v2705_v45, 0.0 }
 0x253   :  { %v2700_v20 = vadd.f32 %v3192_v32, %v2699_v28  ;;  %v2723_v24 = vmax.f32 %v2697_v18, 0.0 }
 0x254   :  { %v2726_v47 = vmax.f32 %v2708_v19, 0.0 }
 0x255   :  { %v2724_v44 = vmax.f32 %v2700_v20, 0.0 }
 0x256   :  { %v2734_v23 = vpack.c.bf16 %v2726_v47, %v2725_v21 }
 0x257   :  { %v2733_v33 = vpack.c.bf16 %v2724_v44, %v2723_v24 }
 0x259   :  { %3527 = vmatprep.mubr.msk.bf16.mxu1 %vm2589_vm0, %v2733_v33 }
 0x25a   :  { %3528 = vmatmul.mubr.msk.bf16.gmra.mrb[76].mxu1 %vm2589_vm0, %v2734_v23 }
 0x2fd   :  { %v3517_v26 = vpop.f32.mrb[64].mxu1 }
 0x2fe   :  { %v2825_v27 = vadd.f32 %v3517_v26, %v4694_v25  ;;  %v2816_v29 = vpop.f32.mrb[65].mxu1 }
 0x2ff   :  { %v2817_v43 = vadd.f32 %v4694_v25, %v2816_v29  ;;  %v3518_v32 = vpop.f32.mrb[66].mxu1 }
 0x300   :  { %v2881_v34 = vmax.f32 %v2825_v27, 0.0  ;;  %v2828_v36 = vadd.f32 %v3518_v32, %v4694_v25  ;;  %v2819_v37 = vpop.f32.mrb[67].mxu1 }
 0x301   :  { %v2879_v38 = vmax.f32 %v2817_v43, 0.0  ;;  %v2820_v61 = vadd.f32 %v4694_v25, %v2819_v37 }
 0x302   :  { %v2882_v39 = vmax.f32 %v2828_v36, 0.0  ;;  %v2904_v40 = vmul.f32 %v4701_v48, %v2881_v34 }
 0x303   :  { %v2880_v51 = vmax.f32 %v2820_v61, 0.0  ;;  %v2902_v41 = vmul.f32 %v4701_v48, %v2879_v38 }
 0x304   :  { %v2924_v42 = vsel %vm2589_vm0, %v2904_v40, 0.0  ;;  %v2905_v46 = vmul.f32 %v4701_v48, %v2882_v39 }
 0x305   :  { %2925 = vadd.xlane.f32.xlu1 %v2924_v42  ;;  %v2918_v0 = vsel %vm2589_vm0, %v2902_v41, 0.0  ;;  %v2903_v49 = vmul.f32 %v4701_v48, %v2880_v51 }
 0x306   :  { %2919 = vadd.xlane.f32.xlu0 %v2918_v0  ;;  %v2927_v53 = vsel %vm2589_vm0, %v2905_v46, 0.0 }
 0x307   :  { %v2921_v50 = vsel %vm2589_vm0, %v2903_v49, 0.0 }
 0x309   :  { %2928 = vadd.xlane.f32.xlu1 %v2927_v53 }
 0x30a   :  { %2922 = vadd.xlane.f32.xlu0 %v2921_v50 }
 0x30d   :  { %v3521_v52 = vpop.f32.mrb[68].mxu1 }
 0x30e   :  { %v2841_v54 = vadd.f32 %v3521_v52, %v4694_v25  ;;  %v2832_v55 = vpop.f32.mrb[69].mxu1 }
 0x30f   :  { %v2833_v56 = vadd.f32 %v4694_v25, %v2832_v55  ;;  %v3522_v57 = vpop.f32.mrb[70].mxu1 }
 0x310   :  { %v2885_v58 = vmax.f32 %v2841_v54, 0.0  ;;  %v2844_v59 = vadd.f32 %v3522_v57, %v4694_v25  ;;  %v2835_v60 = vpop.f32.mrb[71].mxu1  ;;  %v4750_v54 = vand.u32 127, %v298_v30 }
 0x311   :  { %v2883_v62 = vmax.f32 %v2833_v56, 0.0  ;;  %v2836_v63 = vadd.f32 %v4694_v25, %v2835_v60 }
 0x312   :  { %v2886_v14 = vmax.f32 %v2844_v59, 0.0  ;;  %v2908_v5 = vmul.f32 %v4701_v48, %v2885_v58  ;;  %v3006_v56 = vadd.s32 4294967288, %v4750_v54  ;;  %v3004_v30 = vsub.s32 %v4750_v54, %v3966_v35 }
 0x313   :  { %v2884_v1 = vmax.f32 %v2836_v63, 0.0  ;;  %v2906_v31 = vmul.f32 %v4701_v48, %v2883_v62  ;;  %v3013_v62 = vadd.s32 4294967280, %v4750_v54 }
 0x314   :  { %v2936_v2 = vsel %vm2589_vm0, %v2908_v5, 0.0  ;;  %v2909_v3 = vmul.f32 %v4701_v48, %v2886_v14  ;;  %v3009_v59 = vsub.s32 %v3006_v56, %v3966_v35  ;;  %v3027_v5 = vadd.s32 4294967264, %v4750_v54 }
 0x315   :  { %2937 = vadd.xlane.f32.xlu0 %v2936_v2  ;;  %v2907_v7 = vmul.f32 %v4701_v48, %v2884_v1  ;;  %v2930_v16 = vsel %vm2589_vm0, %v2906_v31, 0.0  ;;  %v3020_v1 = vadd.s32 4294967272, %v4750_v54  ;;  %v3016_v31 = vsub.s32 %v3013_v62, %v3966_v35 }
 0x316   :  { %v2939_v4 = vsel %vm2589_vm0, %v2909_v3, 0.0  ;;  %v3090_v56 = vadd.s32 4294967192, %v4750_v54 }
 0x317   :  { %2940 = vadd.xlane.f32.xlu1 %v2939_v4  ;;  %v2933_v6 = vsel %vm2589_vm0, %v2907_v7, 0.0 }
 0x319   :  { %2931 = vadd.xlane.f32.xlu0 %v2930_v16  ;;  %v3034_v16 = vadd.s32 4294967256, %v4750_v54 }
 0x31b   :  { %2934 = vadd.xlane.f32.xlu1 %v2933_v6  ;;  %v3030_v6 = vsub.s32 %v3027_v5, %v3966_v35 }
 0x31d   :  { %v3525_v8 = vpop.f32.mrb[72].mxu1 }
 0x31e   :  { %v2857_v9 = vadd.f32 %v3525_v8, %v4694_v25  ;;  %v2848_v10 = vpop.f32.mrb[73].mxu1 }
 0x31f   :  { %v2849_v11 = vadd.f32 %v4694_v25, %v2848_v10  ;;  %v3526_v12 = vpop.f32.mrb[74].mxu1  ;;  %v3023_v10 = vsub.s32 %v3020_v1, %v3966_v35  ;;  %v3093_v1 = vsub.s32 %v3090_v56, %v3966_v35 }
 0x320   :  { %v2889_v13 = vmax.f32 %v2857_v9, 0.0  ;;  %v2860_v15 = vadd.f32 %v3526_v12, %v4694_v25  ;;  %v2851_v45 = vpop.f32.mrb[75].mxu1 }
 0x321   :  { %v2887_v17 = vmax.f32 %v2849_v11, 0.0  ;;  %v2852_v18 = vadd.f32 %v4694_v25, %v2851_v45 }
 0x322   :  { %v2890_v22 = vmax.f32 %v2860_v15, 0.0  ;;  %v2912_v19 = vmul.f32 %v4701_v48, %v2889_v13  ;;  %v3037_v15 = vsub.s32 %v3034_v16, %v3966_v35 }
 0x323   :  { %v2888_v28 = vmax.f32 %v2852_v18, 0.0  ;;  %v2910_v47 = vmul.f32 %v4701_v48, %v2887_v17  ;;  %v3041_v18 = vadd.s32 4294967248, %v4750_v54 }
 0x324   :  { %v2948_v20 = vsel %vm2589_vm0, %v2912_v19, 0.0  ;;  %v2913_v21 = vmul.f32 %v4701_v48, %v2890_v22 }
 0x325   :  { %2949 = vadd.xlane.f32.xlu0 %v2948_v20  ;;  %v2911_v44 = vmul.f32 %v4701_v48, %v2888_v28  ;;  %v2942_v23 = vsel %vm2589_vm0, %v2910_v47, 0.0  ;;  %v3048_v28 = vadd.s32 4294967240, %v4750_v54 }
 0x326   :  { %v2951_v24 = vsel %vm2589_vm0, %v2913_v21, 0.0  ;;  %v3055_v21 = vadd.s32 4294967232, %v4750_v54 }
 0x327   :  { %2952 = vadd.xlane.f32.xlu1 %v2951_v24  ;;  %v2945_v33 = vsel %vm2589_vm0, %v2911_v44, 0.0  ;;  %v3044_v44 = vsub.s32 %v3041_v18, %v3966_v35 }
 0x329   :  { %2943 = vadd.xlane.f32.xlu0 %v2942_v23 }
 0x32b   :  { %2946 = vadd.xlane.f32.xlu1 %v2945_v33 }
 0x32d   :  { %v3529_v26 = vpop.f32.mrb[76].mxu1 }
 0x32e   :  { %v2873_v27 = vadd.f32 %v3529_v26, %v4694_v25  ;;  %v2864_v29 = vpop.f32.mrb[77].mxu1 }
 0x32f   :  { %v2865_v43 = vadd.f32 %v4694_v25, %v2864_v29  ;;  %v3530_v32 = vpop.f32.mrb[78].mxu1  ;;  %v3051_v29 = vsub.s32 %v3048_v28, %v3966_v35 }
 0x330   :  { %v2876_v34 = vadd.f32 %v3530_v32, %v4694_v25  ;;  %v2867_v36 = vpop.f32.mrb[79].mxu1  ;;  %v2893_v37 = vmax.f32 %v2873_v27, 0.0  ;;  %v3062_v27 = vadd.s32 4294967224, %v4750_v54 }
 0x331   :  { %v2891_v38 = vmax.f32 %v2865_v43, 0.0  ;;  %v2868_v61 = vadd.f32 %v4694_v25, %v2867_v36  ;;  %v3058_v43 = vsub.s32 %v3055_v21, %v3966_v35 }
 0x332   :  { %v2894_v39 = vmax.f32 %v2876_v34, 0.0  ;;  %v2916_v46 = vmul.f32 %v4701_v48, %v2893_v37 }
 0x333   :  { %v2892_v40 = vmax.f32 %v2868_v61, 0.0  ;;  %v2914_v51 = vmul.f32 %v4701_v48, %v2891_v38 }
 0x334   :  { %v2917_v49 = vmul.f32 %v4701_v48, %v2894_v39  ;;  %v2960_v53 = vsel %vm2589_vm0, %v2916_v46, 0.0  ;;  %v3069_v39 = vadd.s32 4294967216, %v4750_v54 }
 0x335   :  { %v2954_v41 = vsel %vm2589_vm0, %v2914_v51, 0.0  ;;  %v2915_v42 = vmul.f32 %v4701_v48, %v2892_v40  ;;  %v4756_v48 = vstv %s4825_s8  ;;  %v3065_v40 = vsub.s32 %v3062_v27, %v3966_v35  ;;  %s3818_s8 = smov [#allocation3]  }
 0x336   :  { %2955 = vadd.xlane.f32.xlu0 %v2954_v41  ;;  %v2963_v25 = vsel %vm2589_vm0, %v2917_v49, 0.0  ;;  %v3076_v49 = vadd.s32 4294967208, %v4750_v54  ;;  %s3119_s19 = sshll.u32 %s3818_s8, 4  ;;  %s3120_s19 = int_to_ptr.vmem [resolvable:$true] %s3119_s19 }
 0x337   :  { %v2957_v0 = vsel %vm2589_vm0, %v2915_v42, 0.0  ;;  %s3793_s20 = scalar_lea.vmem %s3120_s19, 16  ;;  %s3797_s21 = scalar_lea.vmem %s3120_s19, 32 }
 0x338   :  { %2958 = vadd.xlane.f32.xlu1 %v2957_v0  ;;  %v3072_v0 = vsub.s32 %v3069_v39, %v3966_v35  ;;  %p3794_p0 = scmp.ne.s32.totalorder %s3120_s19, %s3793_s20  ;;  %p3798_p1 = scmp.lt.s32.totalorder %s3120_s19, %s3120_s19 }
 0x339   :  { %p3799_p2 = scmp.lt.s32.totalorder %s3797_s21, %s3793_s20 }
 0x33a   :  { %2961 = vadd.xlane.f32.xlu0 %v2960_v53 }
 0x33b   :  { %p3800_p3 = por %p3799_p2, %p3798_p1 }
 0x33c   :  { %2964 = vadd.xlane.f32.xlu1 %v2963_v25 }
 0x33d   :  { %p3801_p4 = pnand %p3800_p3, %p3794_p0 }
 0x392   :  { %v2926_v52 = vpop.xlane.xlu1 %2925 }
 0x393   :  { %v2920_v50 = vpop.xlane.xlu0 %2919  ;;  %v2970_v4 = vadd.f32 %v4756_v48, %v2926_v52 }
 0x394   :  { %v2968_v14 = vadd.f32 %v4756_v48, %v2920_v50 }
 0x395   :  { %v3017_v13 = vrot.slane %v2970_v4, %v3016_v31 }
 0x396   :  { %v2929_v57 = vpop.xlane.xlu1 %2928  ;;  %v3005_v7 = vrot.slane %v2968_v14, %v3004_v30 }
 0x397   :  { %v2923_v55 = vpop.xlane.xlu0 %2922  ;;  %v2971_v11 = vadd.f32 %v4756_v48, %v2929_v57  ;;  %v3079_v57 = vsub.s32 %v3076_v49, %v3966_v35 }
 0x398   :  { %v2969_v60 = vadd.f32 %v4756_v48, %v2923_v55  ;;  %v3083_v55 = vadd.s32 4294967200, %v4750_v54 }
 0x399   :  { %v3024_v19 = vrot.slane %v2971_v11, %v3023_v10 }
 0x39a   :  { %v3010_v2 = vrot.slane %v2969_v60, %v3009_v59  ;;  %v3086_v62 = vsub.s32 %v3083_v55, %v3966_v35 }
 0x39c   :  { %v3012_v12 = vsel %vm3011_vm1, %v3010_v2, %v3005_v7  ;;  %v3104_v2 = vadd.s32 4294967176, %v4750_v54 }
 0x39d   :  { %v3019_v17 = vsel %vm3018_vm2, %v3017_v13, %v3012_v12 }
 0x39e   :  { %v3026_v47 = vsel %vm3025_vm3, %v3024_v19, %v3019_v17  ;;  %v3107_v12 = vsub.s32 %v3104_v2, %v3966_v35 }
 0x3a2   :  { %v2938_v58 = vpop.xlane.xlu0 %2937 }
 0x3a3   :  { %v2974_v23 = vadd.f32 %v4756_v48, %v2938_v58 }
 0x3a4   :  { %v2941_v63 = vpop.xlane.xlu1 %2940 }
 0x3a5   :  { %v2975_v34 = vadd.f32 %v4756_v48, %v2941_v63  ;;  %v3045_v38 = vrot.slane %v2974_v23, %v3044_v44  ;;  %v3097_v63 = vadd.s32 4294967184, %v4750_v54 }
 0x3a6   :  { %v2932_v3 = vpop.xlane.xlu0 %2931 }
 0x3a7   :  { %v2972_v8 = vadd.f32 %v4756_v48, %v2932_v3  ;;  %v3052_v46 = vrot.slane %v2975_v34, %v3051_v29  ;;  %v3100_v16 = vsub.s32 %v3097_v63, %v3966_v35 }
 0x3a8   :  { %v2935_v9 = vpop.xlane.xlu1 %2934 }
 0x3a9   :  { %v2973_v45 = vadd.f32 %v4756_v48, %v2935_v9  ;;  %v3031_v22 = vrot.slane %v2972_v8, %v3030_v6 }
 0x3ab   :  { %v3038_v24 = vrot.slane %v2973_v45, %v3037_v15  ;;  %v3033_v33 = vsel %vm3032_vm4, %v3031_v22, %v3026_v47 }
 0x3ad   :  { %v3040_v36 = vsel %vm3039_vm5, %v3038_v24, %v3033_v33 }
 0x3ae   :  { %v3047_v41 = vsel %vm3046_vm6, %v3045_v38, %v3040_v36 }
 0x3af   :  { %v3054_v53 = vsel %vm3053_vm7, %v3052_v46, %v3047_v41 }
 0x3b2   :  { %v2950_v20 = vpop.xlane.xlu0 %2949 }
 0x3b3   :  { %v2978_v50 = vadd.f32 %v4756_v48, %v2950_v20 }
 0x3b4   :  { %v2953_v26 = vpop.xlane.xlu1 %2952 }
 0x3b5   :  { %v2979_v58 = vadd.f32 %v4756_v48, %v2953_v26  ;;  %v3073_v60 = vrot.slane %v2978_v50, %v3072_v0 }
 0x3b6   :  { %v2944_v32 = vpop.xlane.xlu0 %2943 }
 0x3b7   :  { %v2976_v37 = vadd.f32 %v4756_v48, %v2944_v32  ;;  %v3080_v3 = vrot.slane %v2979_v58, %v3079_v57 }
 0x3b8   :  { %v2947_v61 = vpop.xlane.xlu1 %2946 }
 0x3b9   :  { %v2977_v51 = vadd.f32 %v4756_v48, %v2947_v61  ;;  %v3059_v42 = vrot.slane %v2976_v37, %v3058_v43 }
 0x3bb   :  { %v3066_v25 = vrot.slane %v2977_v51, %v3065_v40  ;;  %v3061_v52 = vsel %vm3060_vm8, %v3059_v42, %v3054_v53 }
 0x3bd   :  { %v3068_v59 = vsel %vm3067_vm9, %v3066_v25, %v3061_v52 }
 0x3be   :  { %v3075_v14 = vsel %vm3074_vm10, %v3073_v60, %v3068_v59 }
 0x3bf   :  { %v3082_v6 = vsel %vm3081_vm11, %v3080_v3, %v3075_v14 }
 0x3c3   :  { %v2956_v30 = vpop.xlane.xlu0 %2955 }
 0x3c4   :  { %v2980_v5 = vadd.f32 %v4756_v48, %v2956_v30 }
 0x3c5   :  { %v2959_v31 = vpop.xlane.xlu1 %2958 }
 0x3c6   :  { %v3087_v4 = vrot.slane %v2980_v5, %v3086_v62  ;;  %v2981_v7 = vadd.f32 %v4756_v48, %v2959_v31 }
 0x3c7   :  { %v2962_v8 = vpop.xlane.xlu0 %2961 }
 0x3c8   :  { %v3089_v9 = vsel %vm3088_vm12, %v3087_v4, %v3082_v6  ;;  %v3094_v10 = vrot.slane %v2981_v7, %v3093_v1  ;;  %v2982_v11 = vadd.f32 %v4756_v48, %v2962_v8 }
 0x3c9   :  { %v2965_v13 = vpop.xlane.xlu1 %2964 }
 0x3ca   :  { %v3101_v54 = vrot.slane %v2982_v11, %v3100_v16  ;;  %v2983_v15 = vadd.f32 %v4756_v48, %v2965_v13  ;;  %v3096_v45 = vsel %vm3095_vm13, %v3094_v10, %v3089_v9 }
 0x3cc   :  { %v3108_v17 = vrot.slane %v2983_v15, %v3107_v12  ;;  %v3103_v18 = vsel %vm3102_vm14, %v3101_v54, %v3096_v45 }
 0x3ce   :  { %v3110_v22 = vsel %vm3109_vm15, %v3108_v17, %v3103_v18 }
 0x3cf   :  { %3112 = vst [vmem:[#allocation3] sm:$0x1] %v3110_v22 }
 0x3d0   :  { %3804 = shalt.err (!%p3801_p4)
}
 0x3d1   :  { %s3805_s24 = scalar_lea.hbm %s4826_s9, 16 }
 0x3d2   :  { %p3806_p5 = scmp.ne.s32.totalorder %s4826_s9, %s3805_s24  ;;  %p3809_p6 = scmp.lt.u32.totalorder %s3805_s24, %s4826_s9 }
 0x3d4   :  { %p3811_p7 = pnand %p3809_p6, %p3806_p5 }
 0x3d6   :  { %3814 = shalt.err (!%p3811_p7)
}
 0x3d7   :  { %3122 = dma.vmem_to_hbm [thread:$0]  %s3120_s19, 16, %s4826_s9, [#allocation4]  }
 0x3d8   :  { %3815 = dma.done.wait [#allocation4], 16  }
 0x3d9   :  { %3816 = vsyncadd [#allocation4], 4294967280 }
 0x3da   :  { %3126 = vsyncpa [#allocation4], 1 }

</bundles_post_ra>
